<compile_context>
chip_gen: v5e
topology: v5e:2x2
jax: 0.10.0
libtpu: 0.0.40
codegen_flags: <defaults>
</compile_context>

<pallas_src>
import functools

import jax
import jax.numpy as jnp
from jax import lax
from jax.experimental import pallas as pl
from jax.experimental.pallas import tpu as pltpu

_EPS = 1e-5  # nn.InstanceNorm2d default eps


# ---------------------------------------------------------------------------
# Fused kernel epilogue: bias + InstanceNorm (masked) + ELU + store
# ---------------------------------------------------------------------------
def _in_elu_epilogue(acc, bias, mask, n_valid, o_ref):
    """acc: (R, Cout) f32 conv result for one instance (rows with mask==0 are
    junk columns of the flattened layout); bias: (1, Cout); mask: (R, 1)."""
    acc = acc + bias
    inv = 1.0 / float(n_valid)
    mean = jnp.sum(acc * mask, axis=0, keepdims=True) * inv
    cen = acc - mean
    var = jnp.sum(cen * cen * mask, axis=0, keepdims=True) * inv
    y = cen * lax.rsqrt(var + _EPS)
    # ELU(alpha=1).  exp(y)-1 (== expm1) -- kept as exp-1 for guaranteed Mosaic
    # lowering; the cancellation error near 0 is far below bf16 activation noise.
    y = jnp.where(y > 0.0, y, jnp.exp(y) - 1.0)
    o_ref[...] = y.astype(o_ref.dtype)


# ---------------------------------------------------------------------------
# Pallas kernels
# ---------------------------------------------------------------------------
def _conv_s1_in_elu_kernel(x_ref, w_ref, b_ref, m_ref, o_ref, *, row_stride, n_valid):
    """Fused 3x3 stride-1 conv (pad=1) + bias + InstanceNorm + ELU, one sample.

    x_ref: (Rin, Cin) bf16  -- spatially padded sample, rows flattened (row
                               stride = row_stride = W+2)
    w_ref: (9, Cin, Cout) bf16 ; b_ref: (1, Cout) f32 ; m_ref: (R, 1) f32
    o_ref: (R, Cout) bf16   -- R = H*(W+2); columns w >= W of each row are junk
    """
    R, Cout = o_ref.shape
    acc = jnp.zeros((R, Cout), jnp.float32)
    for dy in range(3):
        for dx in range(3):
            start = dy * row_stride + dx               # static offset
            a = x_ref[start:start + R, :]              # contiguous 2-D window
            acc = acc + jnp.dot(a, w_ref[dy * 3 + dx],
                                preferred_element_type=jnp.float32)
    _in_elu_epilogue(acc, b_ref[...], m_ref[...], n_valid, o_ref)


def _conv_down_in_elu_kernel(x_ref, w_ref, b_ref, m_ref, o_ref, *, row_stride, n_valid):
    """Fused 3x3 stride-2 conv (pad=1) + bias + InstanceNorm + ELU, one sample.

    x_ref: (4, Rp, Cin) bf16 -- four parity planes (space-to-depth of the
                                padded sample), each flattened with row stride
                                row_stride = Wh.
    o_ref: (R, Cout) bf16    -- R = Ho*Wh; column Wh-1 of each row is junk.
    """
    R, Cout = o_ref.shape
    acc = jnp.zeros((R, Cout), jnp.float32)
    for dy in range(3):
        for dx in range(3):
            p = (dy % 2) * 2 + (dx % 2)                # which parity plane
            start = (dy // 2) * row_stride + (dx // 2)  # static offset in plane
            a = x_ref[p, start:start + R, :]
            acc = acc + jnp.dot(a, w_ref[dy * 3 + dx],
                                preferred_element_type=jnp.float32)
    _in_elu_epilogue(acc, b_ref[...], m_ref[...], n_valid, o_ref)


def _add_elu_kernel(a_ref, b_ref, o_ref):
    y = a_ref[...].astype(jnp.float32) + b_ref[...].astype(jnp.float32)
    o_ref[...] = jnp.where(y > 0.0, y, jnp.exp(y) - 1.0)


# ---------------------------------------------------------------------------
# Pallas-backed layers (channels-last bf16 activations)
# ---------------------------------------------------------------------------
def conv_bn_act(x, w, b):
    """ConvBN: ELU(InstanceNorm(Conv3x3 pad=1 stride=1 (x))).

    x: (N, H, W, Cin) bf16 ; w: (Cout, Cin, 3, 3) f32 ; b: (Cout,) f32.
    Returns (N, H, W, Cout) bf16."""
    N, H, W, Cin = x.shape
    Cout = w.shape[0]
    Wp = W + 2
    R = H * Wp                          # accumulator rows (2 junk cols per row)
    Rin = (H + 3) * Wp                  # pad H by (1,2) so every tap slice is in-bounds
    xp = jnp.pad(x, ((0, 0), (1, 2), (1, 1), (0, 0))).reshape(N, Rin, Cin)
    wk = jnp.transpose(w, (2, 3, 1, 0)).reshape(9, Cin, Cout).astype(jnp.bfloat16)
    bk = b.reshape(1, Cout).astype(jnp.float32)
    mask = (jnp.arange(R, dtype=jnp.int32) % Wp < W).astype(jnp.float32).reshape(R, 1)

    kernel = functools.partial(_conv_s1_in_elu_kernel, row_stride=Wp, n_valid=H * W)
    out = pl.pallas_call(
        kernel,
        out_shape=jax.ShapeDtypeStruct((N, R, Cout), jnp.bfloat16),
        grid=(N,),
        in_specs=[
            pl.BlockSpec((None, Rin, Cin), lambda n: (n, 0, 0)),
            pl.BlockSpec((9, Cin, Cout), lambda n: (0, 0, 0)),
            pl.BlockSpec((1, Cout), lambda n: (0, 0)),
            pl.BlockSpec((R, 1), lambda n: (0, 0)),
        ],
        out_specs=pl.BlockSpec((None, R, Cout), lambda n: (n, 0, 0)),
        compiler_params=pltpu.CompilerParams(dimension_semantics=("parallel",)),
    )(xp, wk, bk, mask)
    return out.reshape(N, H, Wp, Cout)[:, :, :W, :]


def down_conv_bn_act(x, w, b):
    """Down conv: ELU(InstanceNorm(Conv3x3 pad=1 stride=2 (x))).

    x: (N, H, W, Cin) bf16 with even H, W.  Returns (N, H//2, W//2, Cout) bf16."""
    N, H, W, Cin = x.shape
    assert H % 2 == 0 and W % 2 == 0, "stride-2 path assumes even spatial dims"
    Cout = w.shape[0]
    Ho, Wo = H // 2, W // 2
    Hp, Wp = H + 4, W + 2               # pad H by (1,3), W by (1,1): both even
    Hh, Wh = Hp // 2, Wp // 2
    R = Ho * Wh                         # accumulator rows (1 junk col per row)

    xp = jnp.pad(x, ((0, 0), (1, 3), (1, 1), (0, 0)))
    planes = xp.reshape(N, Hh, 2, Wh, 2, Cin).transpose(0, 2, 4, 1, 3, 5)
    planes = planes.reshape(N, 4, Hh * Wh, Cin)          # space-to-depth parity planes
    wk = jnp.transpose(w, (2, 3, 1, 0)).reshape(9, Cin, Cout).astype(jnp.bfloat16)
    bk = b.reshape(1, Cout).astype(jnp.float32)
    mask = (jnp.arange(R, dtype=jnp.int32) % Wh < Wo).astype(jnp.float32).reshape(R, 1)

    kernel = functools.partial(_conv_down_in_elu_kernel, row_stride=Wh, n_valid=Ho * Wo)
    out = pl.pallas_call(
        kernel,
        out_shape=jax.ShapeDtypeStruct((N, R, Cout), jnp.bfloat16),
        grid=(N,),
        in_specs=[
            pl.BlockSpec((None, 4, Hh * Wh, Cin), lambda n: (n, 0, 0, 0)),
            pl.BlockSpec((9, Cin, Cout), lambda n: (0, 0, 0)),
            pl.BlockSpec((1, Cout), lambda n: (0, 0)),
            pl.BlockSpec((R, 1), lambda n: (0, 0)),
        ],
        out_specs=pl.BlockSpec((None, R, Cout), lambda n: (n, 0, 0)),
        compiler_params=pltpu.CompilerParams(dimension_semantics=("parallel",)),
    )(planes, wk, bk, mask)
    return out.reshape(N, Ho, Wh, Cout)[:, :, :Wo, :]


def add_elu(a, b):
    """ELU(a + b).  a, b: (N, H, W, C) bf16 -> (N, H, W, C) f32."""
    N, H, W, C = a.shape
    M = N * H * W
    a2 = a.reshape(M, C)
    b2 = b.reshape(M, C)
    bm = M
    for cand in (2048, 1024, 512, 256, 128, 64, 32, 16, 8):
        if M % cand == 0:
            bm = cand
            break
    out = pl.pallas_call(
        _add_elu_kernel,
        out_shape=jax.ShapeDtypeStruct((M, C), jnp.float32),
        grid=(M // bm,),
        in_specs=[pl.BlockSpec((bm, C), lambda i: (i, 0)),
                  pl.BlockSpec((bm, C), lambda i: (i, 0))],
        out_specs=pl.BlockSpec((bm, C), lambda i: (i, 0)),
        compiler_params=pltpu.CompilerParams(dimension_semantics=("parallel",)),
    )(a2, b2)
    return out.reshape(N, H, W, C)


# ---------------------------------------------------------------------------
# DownTransition forward (NCHW interface, like the PyTorch module)
# ---------------------------------------------------------------------------
def down_transition_forward(params, x_nchw):
    x = jnp.transpose(x_nchw, (0, 2, 3, 1)).astype(jnp.bfloat16)   # NHWC, bf16
    down = down_conv_bn_act(x, params["down"]["w"], params["down"]["b"])
    out = down                          # Dropout2d -> passthrough (default / eval)
    for cp in params["ops"]:
        out = conv_bn_act(out, cp["w"], cp["b"])
    y = add_elu(out, down)              # f32
    return jnp.transpose(y, (0, 3, 1, 2))                          # back to NCHW


# ---------------------------------------------------------------------------
# Pure-JAX f32 reference (for a tolerance check against PyTorch semantics)
# ---------------------------------------------------------------------------
def down_transition_reference(params, x):
    def conv(x, w, b, stride):
        y = lax.conv_general_dilated(
            x, w, window_strides=(stride, stride), padding=((1, 1), (1, 1)),
            dimension_numbers=("NCHW", "OIHW", "NCHW"))
        return y + b[None, :, None, None]

    def inorm_elu(y):
        m = jnp.mean(y, axis=(2, 3), keepdims=True)
        v = jnp.mean((y - m) ** 2, axis=(2, 3), keepdims=True)
        z = (y - m) * lax.rsqrt(v + _EPS)
        return jnp.where(z > 0, z, jnp.exp(z) - 1.0)

    down = inorm_elu(conv(x, params["down"]["w"], params["down"]["b"], 2))
    out = down
    for cp in params["ops"]:
        out = inorm_elu(conv(out, cp["w"], cp["b"], 1))
    s = out + down
    return jnp.where(s > 0, s, jnp.exp(s) - 1.0)


# ---------------------------------------------------------------------------
# Deterministic parameter init
# ---------------------------------------------------------------------------
def _conv_init(key, cout, cin, k=3):
    kw, kb = jax.random.split(key)
    fan_in = float(cin * k * k)
    w = jax.random.normal(kw, (cout, cin, k, k), jnp.float32) / jnp.sqrt(fan_in)
    b = jax.random.normal(kb, (cout,), jnp.float32) * 0.1
    return {"w": w, "b": b}


def init_params(key, in_chans, out_chans, n_convs):
    keys = jax.random.split(key, n_convs + 1)
    return {"down": _conv_init(keys[0], out_chans, in_chans),
            "ops": [_conv_init(keys[i + 1], out_chans, out_chans) for i in range(n_convs)]}


if __name__ == "__main__":
    key = jax.random.PRNGKey(0)
    pkey, xkey = jax.random.split(key)

    IN_CH, OUT_CH, N_CONVS = 4, 32, 2          # DownTransition(4, 32, nConvs=2)
    N, H, W = 2, 16, 16
    params = init_params(pkey, IN_CH, OUT_CH, N_CONVS)
    x = jax.random.normal(xkey, (N, IN_CH, H, W), jnp.float32)

    fwd = jax.jit(down_transition_forward)
    out = jax.block_until_ready(fwd(params, x))

    assert out.shape == (N, OUT_CH, H // 2, W // 2), out.shape
    assert bool(jnp.all(jnp.isfinite(out)))

    ref = jax.block_until_ready(down_transition_reference(params, x))
    err = float(jnp.max(jnp.abs(out - ref)))
    # bf16 GEMM operands / bf16 inter-layer activations vs f32 reference.
    assert err < 0.3, f"max |err| vs f32 reference = {err}"

    print("KERNEL_OK")
</pallas_src>

<mosaic_0001>
module attributes {stable_mosaic.version = 11 : i64} {
  func.func @_conv_down_in_elu_kernel(%arg0: i32, %arg1: memref<1x4x90x4xbf16, #tpu.memory_space<vmem>>, %arg2: memref<9x4x32xbf16, #tpu.memory_space<vmem>>, %arg3: memref<1x32xf32, #tpu.memory_space<vmem>>, %arg4: memref<72x1xf32, #tpu.memory_space<vmem>>, %arg5: memref<1x72x32xbf16, #tpu.memory_space<vmem>>) attributes {dimension_semantics = [#tpu.dimension_semantics<parallel>], iteration_bounds = array<i64: 2>, scalar_prefetch = 0 : i64, scratch_operands = 0 : i64, tpu.core_type = #tpu.core_type<tc>, window_params = [{transform_indices = @transform_0, window_bounds = array<i64: 1, 4, 90, 4>}, {pipeline_mode = #tpu.pipeline_mode<synchronous>, transform_indices = @transform_1, window_bounds = array<i64: 9, 4, 32>}, {pipeline_mode = #tpu.pipeline_mode<synchronous>, transform_indices = @transform_2, window_bounds = array<i64: 1, 32>}, {pipeline_mode = #tpu.pipeline_mode<synchronous>, transform_indices = @transform_3, window_bounds = array<i64: 72, 1>}, {transform_indices = @transform_4, window_bounds = array<i64: 1, 72, 32>}]} {
    %cst = arith.constant 0.000000e+00 : f32
    %0 = vector.broadcast %cst : f32 to vector<72x32xf32>
    %c0 = arith.constant 0 : index
    %c0_0 = arith.constant 0 : index
    %c0_1 = arith.constant 0 : index
    %c0_2 = arith.constant 0 : index
    %1 = vector.load %arg1[%c0, %c0_0, %c0_1, %c0_2] : memref<1x4x90x4xbf16, #tpu.memory_space<vmem>>, vector<1x1x72x4xbf16>
    %2 = vector.shape_cast %1 : vector<1x1x72x4xbf16> to vector<72x4xbf16>
    %c0_3 = arith.constant 0 : index
    %c0_4 = arith.constant 0 : index
    %c0_5 = arith.constant 0 : index
    %3 = vector.load %arg2[%c0_3, %c0_4, %c0_5] : memref<9x4x32xbf16, #tpu.memory_space<vmem>>, vector<1x4x32xbf16>
    %4 = vector.shape_cast %3 : vector<1x4x32xbf16> to vector<4x32xbf16>
    %cst_6 = arith.constant dense<0.000000e+00> : vector<72x32xf32>
    %5 = tpu.matmul %2, %4, %cst_6 {dimension_numbers = #tpu.dot_dimension_numbers<[1], [0], [0], [1], [0, 0, 1, 1], [], []>} : vector<72x4xbf16>, vector<4x32xbf16>, vector<72x32xf32> -> vector<72x32xf32>
    %6 = arith.addf %0, %5 : vector<72x32xf32>
    %c0_7 = arith.constant 0 : index
    %c1 = arith.constant 1 : index
    %c0_8 = arith.constant 0 : index
    %c0_9 = arith.constant 0 : index
    %7 = vector.load %arg1[%c0_7, %c1, %c0_8, %c0_9] : memref<1x4x90x4xbf16, #tpu.memory_space<vmem>>, vector<1x1x72x4xbf16>
    %8 = vector.shape_cast %7 : vector<1x1x72x4xbf16> to vector<72x4xbf16>
    %c1_10 = arith.constant 1 : index
    %c0_11 = arith.constant 0 : index
    %c0_12 = arith.constant 0 : index
    %9 = vector.load %arg2[%c1_10, %c0_11, %c0_12] : memref<9x4x32xbf16, #tpu.memory_space<vmem>>, vector<1x4x32xbf16>
    %10 = vector.shape_cast %9 : vector<1x4x32xbf16> to vector<4x32xbf16>
    %cst_13 = arith.constant dense<0.000000e+00> : vector<72x32xf32>
    %11 = tpu.matmul %8, %10, %cst_13 {dimension_numbers = #tpu.dot_dimension_numbers<[1], [0], [0], [1], [0, 0, 1, 1], [], []>} : vector<72x4xbf16>, vector<4x32xbf16>, vector<72x32xf32> -> vector<72x32xf32>
    %12 = arith.addf %6, %11 : vector<72x32xf32>
    %c0_14 = arith.constant 0 : index
    %c0_15 = arith.constant 0 : index
    %c1_16 = arith.constant 1 : index
    %c0_17 = arith.constant 0 : index
    %13 = vector.load %arg1[%c0_14, %c0_15, %c1_16, %c0_17] : memref<1x4x90x4xbf16, #tpu.memory_space<vmem>>, vector<1x1x72x4xbf16>
    %14 = vector.shape_cast %13 : vector<1x1x72x4xbf16> to vector<72x4xbf16>
    %c2 = arith.constant 2 : index
    %c0_18 = arith.constant 0 : index
    %c0_19 = arith.constant 0 : index
    %15 = vector.load %arg2[%c2, %c0_18, %c0_19] : memref<9x4x32xbf16, #tpu.memory_space<vmem>>, vector<1x4x32xbf16>
    %16 = vector.shape_cast %15 : vector<1x4x32xbf16> to vector<4x32xbf16>
    %cst_20 = arith.constant dense<0.000000e+00> : vector<72x32xf32>
    %17 = tpu.matmul %14, %16, %cst_20 {dimension_numbers = #tpu.dot_dimension_numbers<[1], [0], [0], [1], [0, 0, 1, 1], [], []>} : vector<72x4xbf16>, vector<4x32xbf16>, vector<72x32xf32> -> vector<72x32xf32>
    %18 = arith.addf %12, %17 : vector<72x32xf32>
    %c0_21 = arith.constant 0 : index
    %c2_22 = arith.constant 2 : index
    %c0_23 = arith.constant 0 : index
    %c0_24 = arith.constant 0 : index
    %19 = vector.load %arg1[%c0_21, %c2_22, %c0_23, %c0_24] : memref<1x4x90x4xbf16, #tpu.memory_space<vmem>>, vector<1x1x72x4xbf16>
    %20 = vector.shape_cast %19 : vector<1x1x72x4xbf16> to vector<72x4xbf16>
    %c3 = arith.constant 3 : index
    %c0_25 = arith.constant 0 : index
    %c0_26 = arith.constant 0 : index
    %21 = vector.load %arg2[%c3, %c0_25, %c0_26] : memref<9x4x32xbf16, #tpu.memory_space<vmem>>, vector<1x4x32xbf16>
    %22 = vector.shape_cast %21 : vector<1x4x32xbf16> to vector<4x32xbf16>
    %cst_27 = arith.constant dense<0.000000e+00> : vector<72x32xf32>
    %23 = tpu.matmul %20, %22, %cst_27 {dimension_numbers = #tpu.dot_dimension_numbers<[1], [0], [0], [1], [0, 0, 1, 1], [], []>} : vector<72x4xbf16>, vector<4x32xbf16>, vector<72x32xf32> -> vector<72x32xf32>
    %24 = arith.addf %18, %23 : vector<72x32xf32>
    %c0_28 = arith.constant 0 : index
    %c3_29 = arith.constant 3 : index
    %c0_30 = arith.constant 0 : index
    %c0_31 = arith.constant 0 : index
    %25 = vector.load %arg1[%c0_28, %c3_29, %c0_30, %c0_31] : memref<1x4x90x4xbf16, #tpu.memory_space<vmem>>, vector<1x1x72x4xbf16>
    %26 = vector.shape_cast %25 : vector<1x1x72x4xbf16> to vector<72x4xbf16>
    %c4 = arith.constant 4 : index
    %c0_32 = arith.constant 0 : index
    %c0_33 = arith.constant 0 : index
    %27 = vector.load %arg2[%c4, %c0_32, %c0_33] : memref<9x4x32xbf16, #tpu.memory_space<vmem>>, vector<1x4x32xbf16>
    %28 = vector.shape_cast %27 : vector<1x4x32xbf16> to vector<4x32xbf16>
    %cst_34 = arith.constant dense<0.000000e+00> : vector<72x32xf32>
    %29 = tpu.matmul %26, %28, %cst_34 {dimension_numbers = #tpu.dot_dimension_numbers<[1], [0], [0], [1], [0, 0, 1, 1], [], []>} : vector<72x4xbf16>, vector<4x32xbf16>, vector<72x32xf32> -> vector<72x32xf32>
    %30 = arith.addf %24, %29 : vector<72x32xf32>
    %c0_35 = arith.constant 0 : index
    %c2_36 = arith.constant 2 : index
    %c1_37 = arith.constant 1 : index
    %c0_38 = arith.constant 0 : index
    %31 = vector.load %arg1[%c0_35, %c2_36, %c1_37, %c0_38] : memref<1x4x90x4xbf16, #tpu.memory_space<vmem>>, vector<1x1x72x4xbf16>
    %32 = vector.shape_cast %31 : vector<1x1x72x4xbf16> to vector<72x4xbf16>
    %c5 = arith.constant 5 : index
    %c0_39 = arith.constant 0 : index
    %c0_40 = arith.constant 0 : index
    %33 = vector.load %arg2[%c5, %c0_39, %c0_40] : memref<9x4x32xbf16, #tpu.memory_space<vmem>>, vector<1x4x32xbf16>
    %34 = vector.shape_cast %33 : vector<1x4x32xbf16> to vector<4x32xbf16>
    %cst_41 = arith.constant dense<0.000000e+00> : vector<72x32xf32>
    %35 = tpu.matmul %32, %34, %cst_41 {dimension_numbers = #tpu.dot_dimension_numbers<[1], [0], [0], [1], [0, 0, 1, 1], [], []>} : vector<72x4xbf16>, vector<4x32xbf16>, vector<72x32xf32> -> vector<72x32xf32>
    %36 = arith.addf %30, %35 : vector<72x32xf32>
    %c0_42 = arith.constant 0 : index
    %c0_43 = arith.constant 0 : index
    %c9 = arith.constant 9 : index
    %c0_44 = arith.constant 0 : index
    %37 = vector.load %arg1[%c0_42, %c0_43, %c9, %c0_44] : memref<1x4x90x4xbf16, #tpu.memory_space<vmem>>, vector<1x1x72x4xbf16>
    %38 = vector.shape_cast %37 : vector<1x1x72x4xbf16> to vector<72x4xbf16>
    %c6 = arith.constant 6 : index
    %c0_45 = arith.constant 0 : index
    %c0_46 = arith.constant 0 : index
    %39 = vector.load %arg2[%c6, %c0_45, %c0_46] : memref<9x4x32xbf16, #tpu.memory_space<vmem>>, vector<1x4x32xbf16>
    %40 = vector.shape_cast %39 : vector<1x4x32xbf16> to vector<4x32xbf16>
    %cst_47 = arith.constant dense<0.000000e+00> : vector<72x32xf32>
    %41 = tpu.matmul %38, %40, %cst_47 {dimension_numbers = #tpu.dot_dimension_numbers<[1], [0], [0], [1], [0, 0, 1, 1], [], []>} : vector<72x4xbf16>, vector<4x32xbf16>, vector<72x32xf32> -> vector<72x32xf32>
    %42 = arith.addf %36, %41 : vector<72x32xf32>
    %c0_48 = arith.constant 0 : index
    %c1_49 = arith.constant 1 : index
    %c9_50 = arith.constant 9 : index
    %c0_51 = arith.constant 0 : index
    %43 = vector.load %arg1[%c0_48, %c1_49, %c9_50, %c0_51] : memref<1x4x90x4xbf16, #tpu.memory_space<vmem>>, vector<1x1x72x4xbf16>
    %44 = vector.shape_cast %43 : vector<1x1x72x4xbf16> to vector<72x4xbf16>
    %c7 = arith.constant 7 : index
    %c0_52 = arith.constant 0 : index
    %c0_53 = arith.constant 0 : index
    %45 = vector.load %arg2[%c7, %c0_52, %c0_53] : memref<9x4x32xbf16, #tpu.memory_space<vmem>>, vector<1x4x32xbf16>
    %46 = vector.shape_cast %45 : vector<1x4x32xbf16> to vector<4x32xbf16>
    %cst_54 = arith.constant dense<0.000000e+00> : vector<72x32xf32>
    %47 = tpu.matmul %44, %46, %cst_54 {dimension_numbers = #tpu.dot_dimension_numbers<[1], [0], [0], [1], [0, 0, 1, 1], [], []>} : vector<72x4xbf16>, vector<4x32xbf16>, vector<72x32xf32> -> vector<72x32xf32>
    %48 = arith.addf %42, %47 : vector<72x32xf32>
    %c0_55 = arith.constant 0 : index
    %c0_56 = arith.constant 0 : index
    %c10 = arith.constant 10 : index
    %c0_57 = arith.constant 0 : index
    %49 = vector.load %arg1[%c0_55, %c0_56, %c10, %c0_57] : memref<1x4x90x4xbf16, #tpu.memory_space<vmem>>, vector<1x1x72x4xbf16>
    %50 = vector.shape_cast %49 : vector<1x1x72x4xbf16> to vector<72x4xbf16>
    %c8 = arith.constant 8 : index
    %c0_58 = arith.constant 0 : index
    %c0_59 = arith.constant 0 : index
    %51 = vector.load %arg2[%c8, %c0_58, %c0_59] : memref<9x4x32xbf16, #tpu.memory_space<vmem>>, vector<1x4x32xbf16>
    %52 = vector.shape_cast %51 : vector<1x4x32xbf16> to vector<4x32xbf16>
    %cst_60 = arith.constant dense<0.000000e+00> : vector<72x32xf32>
    %53 = tpu.matmul %50, %52, %cst_60 {dimension_numbers = #tpu.dot_dimension_numbers<[1], [0], [0], [1], [0, 0, 1, 1], [], []>} : vector<72x4xbf16>, vector<4x32xbf16>, vector<72x32xf32> -> vector<72x32xf32>
    %54 = arith.addf %48, %53 : vector<72x32xf32>
    %c0_61 = arith.constant 0 : index
    %c0_62 = arith.constant 0 : index
    %55 = vector.load %arg3[%c0_61, %c0_62] : memref<1x32xf32, #tpu.memory_space<vmem>>, vector<1x32xf32>
    %c0_63 = arith.constant 0 : index
    %c0_64 = arith.constant 0 : index
    %56 = vector.load %arg4[%c0_63, %c0_64] : memref<72x1xf32, #tpu.memory_space<vmem>>, vector<72x1xf32>
    %57 = vector.broadcast %55 : vector<1x32xf32> to vector<72x32xf32>
    %58 = arith.addf %54, %57 : vector<72x32xf32>
    %59 = vector.broadcast %56 : vector<72x1xf32> to vector<72x32xf32>
    %60 = arith.mulf %58, %59 : vector<72x32xf32>
    %cst_65 = arith.constant dense<0.000000e+00> : vector<32xf32>
    %61 = vector.multi_reduction <add>, %60, %cst_65 [0] : vector<72x32xf32> to vector<32xf32>
    %62 = vector.shape_cast %61 : vector<32xf32> to vector<1x32xf32>
    %cst_66 = arith.constant 1.562500e-02 : f32
    %63 = vector.broadcast %cst_66 : f32 to vector<1x32xf32>
    %64 = arith.mulf %62, %63 : vector<1x32xf32>
    %65 = vector.broadcast %64 : vector<1x32xf32> to vector<72x32xf32>
    %66 = arith.subf %58, %65 : vector<72x32xf32>
    %67 = arith.mulf %66, %66 : vector<72x32xf32>
    %68 = vector.broadcast %56 : vector<72x1xf32> to vector<72x32xf32>
    %69 = arith.mulf %67, %68 : vector<72x32xf32>
    %cst_67 = arith.constant dense<0.000000e+00> : vector<32xf32>
    %70 = vector.multi_reduction <add>, %69, %cst_67 [0] : vector<72x32xf32> to vector<32xf32>
    %71 = vector.shape_cast %70 : vector<32xf32> to vector<1x32xf32>
    %cst_68 = arith.constant 1.562500e-02 : f32
    %72 = vector.broadcast %cst_68 : f32 to vector<1x32xf32>
    %73 = arith.mulf %71, %72 : vector<1x32xf32>
    %cst_69 = arith.constant 9.99999974E-6 : f32
    %74 = vector.broadcast %cst_69 : f32 to vector<1x32xf32>
    %75 = arith.addf %73, %74 : vector<1x32xf32>
    %76 = math.rsqrt %75 : vector<1x32xf32>
    %77 = vector.broadcast %76 : vector<1x32xf32> to vector<72x32xf32>
    %78 = arith.mulf %66, %77 : vector<72x32xf32>
    %cst_70 = arith.constant 0.000000e+00 : f32
    %79 = vector.broadcast %cst_70 : f32 to vector<72x32xf32>
    %80 = arith.cmpf ogt, %78, %79 : vector<72x32xf32>
    %81 = math.exp %78 : vector<72x32xf32>
    %cst_71 = arith.constant 1.000000e+00 : f32
    %82 = vector.broadcast %cst_71 : f32 to vector<72x32xf32>
    %83 = arith.subf %81, %82 : vector<72x32xf32>
    %84 = arith.select %80, %78, %83 : vector<72x32xi1>, vector<72x32xf32>
    %85 = arith.truncf %84 : vector<72x32xf32> to vector<72x32xbf16>
    %c0_72 = arith.constant 0 : index
    %c0_73 = arith.constant 0 : index
    %c0_74 = arith.constant 0 : index
    %86 = vector.load %arg5[%c0_72, %c0_73, %c0_74] : memref<1x72x32xbf16, #tpu.memory_space<vmem>>, vector<1x72x32xbf16>
    %87 = vector.shape_cast %86 : vector<1x72x32xbf16> to vector<72x32xbf16>
    %88 = vector.shape_cast %85 : vector<72x32xbf16> to vector<1x72x32xbf16>
    tpu.vector_store %arg5[%c0_72, %c0_73, %c0_74], %88 {strides = array<i32>} : memref<1x72x32xbf16, #tpu.memory_space<vmem>>, vector<1x72x32xbf16>,
    return
  }
  func.func @transform_0(%arg0: i32) -> (i32, i32, i32, i32) {
    %c0_i32 = arith.constant 0 : i32
    %c0_i32_0 = arith.constant 0 : i32
    %c0_i32_1 = arith.constant 0 : i32
    %c0_i32_2 = arith.constant 0 : i32
    return %arg0, %c0_i32, %c0_i32_0, %c0_i32_1 : i32, i32, i32, i32
  }
  func.func @transform_1(%arg0: i32) -> (i32, i32, i32) {
    %c0_i32 = arith.constant 0 : i32
    %c0_i32_0 = arith.constant 0 : i32
    %c0_i32_1 = arith.constant 0 : i32
    %c0_i32_2 = arith.constant 0 : i32
    return %c0_i32, %c0_i32_0, %c0_i32_1 : i32, i32, i32
  }
  func.func @transform_2(%arg0: i32) -> (i32, i32) {
    %c0_i32 = arith.constant 0 : i32
    %c0_i32_0 = arith.constant 0 : i32
    %c0_i32_1 = arith.constant 0 : i32
    return %c0_i32, %c0_i32_0 : i32, i32
  }
  func.func @transform_3(%arg0: i32) -> (i32, i32) {
    %c0_i32 = arith.constant 0 : i32
    %c0_i32_0 = arith.constant 0 : i32
    %c0_i32_1 = arith.constant 0 : i32
    return %c0_i32, %c0_i32_0 : i32, i32
  }
  func.func @transform_4(%arg0: i32) -> (i32, i32, i32) {
    %c0_i32 = arith.constant 0 : i32
    %c0_i32_0 = arith.constant 0 : i32
    %c0_i32_1 = arith.constant 0 : i32
    return %arg0, %c0_i32, %c0_i32_0 : i32, i32, i32
  }
}

module attributes {stable_mosaic.version = 11 : i64} {
  func.func @_conv_s1_in_elu_kernel(%arg0: i32, %arg1: memref<1x110x32xbf16, #tpu.memory_space<vmem>>, %arg2: memref<9x32x32xbf16, #tpu.memory_space<vmem>>, %arg3: memref<1x32xf32, #tpu.memory_space<vmem>>, %arg4: memref<80x1xf32, #tpu.memory_space<vmem>>, %arg5: memref<1x80x32xbf16, #tpu.memory_space<vmem>>) attributes {dimension_semantics = [#tpu.dimension_semantics<parallel>], iteration_bounds = array<i64: 2>, scalar_prefetch = 0 : i64, scratch_operands = 0 : i64, tpu.core_type = #tpu.core_type<tc>, window_params = [{transform_indices = @transform_0, window_bounds = array<i64: 1, 110, 32>}, {pipeline_mode = #tpu.pipeline_mode<synchronous>, transform_indices = @transform_1, window_bounds = array<i64: 9, 32, 32>}, {pipeline_mode = #tpu.pipeline_mode<synchronous>, transform_indices = @transform_2, window_bounds = array<i64: 1, 32>}, {pipeline_mode = #tpu.pipeline_mode<synchronous>, transform_indices = @transform_3, window_bounds = array<i64: 80, 1>}, {transform_indices = @transform_4, window_bounds = array<i64: 1, 80, 32>}]} {
    %cst = arith.constant 0.000000e+00 : f32
    %0 = vector.broadcast %cst : f32 to vector<80x32xf32>
    %c0 = arith.constant 0 : index
    %c0_0 = arith.constant 0 : index
    %c0_1 = arith.constant 0 : index
    %1 = vector.load %arg1[%c0, %c0_0, %c0_1] : memref<1x110x32xbf16, #tpu.memory_space<vmem>>, vector<1x80x32xbf16>
    %2 = vector.shape_cast %1 : vector<1x80x32xbf16> to vector<80x32xbf16>
    %c0_2 = arith.constant 0 : index
    %c0_3 = arith.constant 0 : index
    %c0_4 = arith.constant 0 : index
    %3 = vector.load %arg2[%c0_2, %c0_3, %c0_4] : memref<9x32x32xbf16, #tpu.memory_space<vmem>>, vector<1x32x32xbf16>
    %4 = vector.shape_cast %3 : vector<1x32x32xbf16> to vector<32x32xbf16>
    %cst_5 = arith.constant dense<0.000000e+00> : vector<80x32xf32>
    %5 = tpu.matmul %2, %4, %cst_5 {dimension_numbers = #tpu.dot_dimension_numbers<[1], [0], [0], [1], [0, 0, 1, 1], [], []>} : vector<80x32xbf16>, vector<32x32xbf16>, vector<80x32xf32> -> vector<80x32xf32>
    %6 = arith.addf %0, %5 : vector<80x32xf32>
    %c0_6 = arith.constant 0 : index
    %c1 = arith.constant 1 : index
    %c0_7 = arith.constant 0 : index
    %7 = vector.load %arg1[%c0_6, %c1, %c0_7] : memref<1x110x32xbf16, #tpu.memory_space<vmem>>, vector<1x80x32xbf16>
    %8 = vector.shape_cast %7 : vector<1x80x32xbf16> to vector<80x32xbf16>
    %c1_8 = arith.constant 1 : index
    %c0_9 = arith.constant 0 : index
    %c0_10 = arith.constant 0 : index
    %9 = vector.load %arg2[%c1_8, %c0_9, %c0_10] : memref<9x32x32xbf16, #tpu.memory_space<vmem>>, vector<1x32x32xbf16>
    %10 = vector.shape_cast %9 : vector<1x32x32xbf16> to vector<32x32xbf16>
    %cst_11 = arith.constant dense<0.000000e+00> : vector<80x32xf32>
    %11 = tpu.matmul %8, %10, %cst_11 {dimension_numbers = #tpu.dot_dimension_numbers<[1], [0], [0], [1], [0, 0, 1, 1], [], []>} : vector<80x32xbf16>, vector<32x32xbf16>, vector<80x32xf32> -> vector<80x32xf32>
    %12 = arith.addf %6, %11 : vector<80x32xf32>
    %c0_12 = arith.constant 0 : index
    %c2 = arith.constant 2 : index
    %c0_13 = arith.constant 0 : index
    %13 = vector.load %arg1[%c0_12, %c2, %c0_13] : memref<1x110x32xbf16, #tpu.memory_space<vmem>>, vector<1x80x32xbf16>
    %14 = vector.shape_cast %13 : vector<1x80x32xbf16> to vector<80x32xbf16>
    %c2_14 = arith.constant 2 : index
    %c0_15 = arith.constant 0 : index
    %c0_16 = arith.constant 0 : index
    %15 = vector.load %arg2[%c2_14, %c0_15, %c0_16] : memref<9x32x32xbf16, #tpu.memory_space<vmem>>, vector<1x32x32xbf16>
    %16 = vector.shape_cast %15 : vector<1x32x32xbf16> to vector<32x32xbf16>
    %cst_17 = arith.constant dense<0.000000e+00> : vector<80x32xf32>
    %17 = tpu.matmul %14, %16, %cst_17 {dimension_numbers = #tpu.dot_dimension_numbers<[1], [0], [0], [1], [0, 0, 1, 1], [], []>} : vector<80x32xbf16>, vector<32x32xbf16>, vector<80x32xf32> -> vector<80x32xf32>
    %18 = arith.addf %12, %17 : vector<80x32xf32>
    %c0_18 = arith.constant 0 : index
    %c10 = arith.constant 10 : index
    %c0_19 = arith.constant 0 : index
    %19 = vector.load %arg1[%c0_18, %c10, %c0_19] : memref<1x110x32xbf16, #tpu.memory_space<vmem>>, vector<1x80x32xbf16>
    %20 = vector.shape_cast %19 : vector<1x80x32xbf16> to vector<80x32xbf16>
    %c3 = arith.constant 3 : index
    %c0_20 = arith.constant 0 : index
    %c0_21 = arith.constant 0 : index
    %21 = vector.load %arg2[%c3, %c0_20, %c0_21] : memref<9x32x32xbf16, #tpu.memory_space<vmem>>, vector<1x32x32xbf16>
    %22 = vector.shape_cast %21 : vector<1x32x32xbf16> to vector<32x32xbf16>
    %cst_22 = arith.constant dense<0.000000e+00> : vector<80x32xf32>
    %23 = tpu.matmul %20, %22, %cst_22 {dimension_numbers = #tpu.dot_dimension_numbers<[1], [0], [0], [1], [0, 0, 1, 1], [], []>} : vector<80x32xbf16>, vector<32x32xbf16>, vector<80x32xf32> -> vector<80x32xf32>
    %24 = arith.addf %18, %23 : vector<80x32xf32>
    %c0_23 = arith.constant 0 : index
    %c11 = arith.constant 11 : index
    %c0_24 = arith.constant 0 : index
    %25 = vector.load %arg1[%c0_23, %c11, %c0_24] : memref<1x110x32xbf16, #tpu.memory_space<vmem>>, vector<1x80x32xbf16>
    %26 = vector.shape_cast %25 : vector<1x80x32xbf16> to vector<80x32xbf16>
    %c4 = arith.constant 4 : index
    %c0_25 = arith.constant 0 : index
    %c0_26 = arith.constant 0 : index
    %27 = vector.load %arg2[%c4, %c0_25, %c0_26] : memref<9x32x32xbf16, #tpu.memory_space<vmem>>, vector<1x32x32xbf16>
    %28 = vector.shape_cast %27 : vector<1x32x32xbf16> to vector<32x32xbf16>
    %cst_27 = arith.constant dense<0.000000e+00> : vector<80x32xf32>
    %29 = tpu.matmul %26, %28, %cst_27 {dimension_numbers = #tpu.dot_dimension_numbers<[1], [0], [0], [1], [0, 0, 1, 1], [], []>} : vector<80x32xbf16>, vector<32x32xbf16>, vector<80x32xf32> -> vector<80x32xf32>
    %30 = arith.addf %24, %29 : vector<80x32xf32>
    %c0_28 = arith.constant 0 : index
    %c12 = arith.constant 12 : index
    %c0_29 = arith.constant 0 : index
    %31 = vector.load %arg1[%c0_28, %c12, %c0_29] : memref<1x110x32xbf16, #tpu.memory_space<vmem>>, vector<1x80x32xbf16>
    %32 = vector.shape_cast %31 : vector<1x80x32xbf16> to vector<80x32xbf16>
    %c5 = arith.constant 5 : index
    %c0_30 = arith.constant 0 : index
    %c0_31 = arith.constant 0 : index
    %33 = vector.load %arg2[%c5, %c0_30, %c0_31] : memref<9x32x32xbf16, #tpu.memory_space<vmem>>, vector<1x32x32xbf16>
    %34 = vector.shape_cast %33 : vector<1x32x32xbf16> to vector<32x32xbf16>
    %cst_32 = arith.constant dense<0.000000e+00> : vector<80x32xf32>
    %35 = tpu.matmul %32, %34, %cst_32 {dimension_numbers = #tpu.dot_dimension_numbers<[1], [0], [0], [1], [0, 0, 1, 1], [], []>} : vector<80x32xbf16>, vector<32x32xbf16>, vector<80x32xf32> -> vector<80x32xf32>
    %36 = arith.addf %30, %35 : vector<80x32xf32>
    %c0_33 = arith.constant 0 : index
    %c20 = arith.constant 20 : index
    %c0_34 = arith.constant 0 : index
    %37 = vector.load %arg1[%c0_33, %c20, %c0_34] : memref<1x110x32xbf16, #tpu.memory_space<vmem>>, vector<1x80x32xbf16>
    %38 = vector.shape_cast %37 : vector<1x80x32xbf16> to vector<80x32xbf16>
    %c6 = arith.constant 6 : index
    %c0_35 = arith.constant 0 : index
    %c0_36 = arith.constant 0 : index
    %39 = vector.load %arg2[%c6, %c0_35, %c0_36] : memref<9x32x32xbf16, #tpu.memory_space<vmem>>, vector<1x32x32xbf16>
    %40 = vector.shape_cast %39 : vector<1x32x32xbf16> to vector<32x32xbf16>
    %cst_37 = arith.constant dense<0.000000e+00> : vector<80x32xf32>
    %41 = tpu.matmul %38, %40, %cst_37 {dimension_numbers = #tpu.dot_dimension_numbers<[1], [0], [0], [1], [0, 0, 1, 1], [], []>} : vector<80x32xbf16>, vector<32x32xbf16>, vector<80x32xf32> -> vector<80x32xf32>
    %42 = arith.addf %36, %41 : vector<80x32xf32>
    %c0_38 = arith.constant 0 : index
    %c21 = arith.constant 21 : index
    %c0_39 = arith.constant 0 : index
    %43 = vector.load %arg1[%c0_38, %c21, %c0_39] : memref<1x110x32xbf16, #tpu.memory_space<vmem>>, vector<1x80x32xbf16>
    %44 = vector.shape_cast %43 : vector<1x80x32xbf16> to vector<80x32xbf16>
    %c7 = arith.constant 7 : index
    %c0_40 = arith.constant 0 : index
    %c0_41 = arith.constant 0 : index
    %45 = vector.load %arg2[%c7, %c0_40, %c0_41] : memref<9x32x32xbf16, #tpu.memory_space<vmem>>, vector<1x32x32xbf16>
    %46 = vector.shape_cast %45 : vector<1x32x32xbf16> to vector<32x32xbf16>
    %cst_42 = arith.constant dense<0.000000e+00> : vector<80x32xf32>
    %47 = tpu.matmul %44, %46, %cst_42 {dimension_numbers = #tpu.dot_dimension_numbers<[1], [0], [0], [1], [0, 0, 1, 1], [], []>} : vector<80x32xbf16>, vector<32x32xbf16>, vector<80x32xf32> -> vector<80x32xf32>
    %48 = arith.addf %42, %47 : vector<80x32xf32>
    %c0_43 = arith.constant 0 : index
    %c22 = arith.constant 22 : index
    %c0_44 = arith.constant 0 : index
    %49 = vector.load %arg1[%c0_43, %c22, %c0_44] : memref<1x110x32xbf16, #tpu.memory_space<vmem>>, vector<1x80x32xbf16>
    %50 = vector.shape_cast %49 : vector<1x80x32xbf16> to vector<80x32xbf16>
    %c8 = arith.constant 8 : index
    %c0_45 = arith.constant 0 : index
    %c0_46 = arith.constant 0 : index
    %51 = vector.load %arg2[%c8, %c0_45, %c0_46] : memref<9x32x32xbf16, #tpu.memory_space<vmem>>, vector<1x32x32xbf16>
    %52 = vector.shape_cast %51 : vector<1x32x32xbf16> to vector<32x32xbf16>
    %cst_47 = arith.constant dense<0.000000e+00> : vector<80x32xf32>
    %53 = tpu.matmul %50, %52, %cst_47 {dimension_numbers = #tpu.dot_dimension_numbers<[1], [0], [0], [1], [0, 0, 1, 1], [], []>} : vector<80x32xbf16>, vector<32x32xbf16>, vector<80x32xf32> -> vector<80x32xf32>
    %54 = arith.addf %48, %53 : vector<80x32xf32>
    %c0_48 = arith.constant 0 : index
    %c0_49 = arith.constant 0 : index
    %55 = vector.load %arg3[%c0_48, %c0_49] : memref<1x32xf32, #tpu.memory_space<vmem>>, vector<1x32xf32>
    %c0_50 = arith.constant 0 : index
    %c0_51 = arith.constant 0 : index
    %56 = vector.load %arg4[%c0_50, %c0_51] : memref<80x1xf32, #tpu.memory_space<vmem>>, vector<80x1xf32>
    %57 = vector.broadcast %55 : vector<1x32xf32> to vector<80x32xf32>
    %58 = arith.addf %54, %57 : vector<80x32xf32>
    %59 = vector.broadcast %56 : vector<80x1xf32> to vector<80x32xf32>
    %60 = arith.mulf %58, %59 : vector<80x32xf32>
    %cst_52 = arith.constant dense<0.000000e+00> : vector<32xf32>
    %61 = vector.multi_reduction <add>, %60, %cst_52 [0] : vector<80x32xf32> to vector<32xf32>
    %62 = vector.shape_cast %61 : vector<32xf32> to vector<1x32xf32>
    %cst_53 = arith.constant 1.562500e-02 : f32
    %63 = vector.broadcast %cst_53 : f32 to vector<1x32xf32>
    %64 = arith.mulf %62, %63 : vector<1x32xf32>
    %65 = vector.broadcast %64 : vector<1x32xf32> to vector<80x32xf32>
    %66 = arith.subf %58, %65 : vector<80x32xf32>
    %67 = arith.mulf %66, %66 : vector<80x32xf32>
    %68 = vector.broadcast %56 : vector<80x1xf32> to vector<80x32xf32>
    %69 = arith.mulf %67, %68 : vector<80x32xf32>
    %cst_54 = arith.constant dense<0.000000e+00> : vector<32xf32>
    %70 = vector.multi_reduction <add>, %69, %cst_54 [0] : vector<80x32xf32> to vector<32xf32>
    %71 = vector.shape_cast %70 : vector<32xf32> to vector<1x32xf32>
    %cst_55 = arith.constant 1.562500e-02 : f32
    %72 = vector.broadcast %cst_55 : f32 to vector<1x32xf32>
    %73 = arith.mulf %71, %72 : vector<1x32xf32>
    %cst_56 = arith.constant 9.99999974E-6 : f32
    %74 = vector.broadcast %cst_56 : f32 to vector<1x32xf32>
    %75 = arith.addf %73, %74 : vector<1x32xf32>
    %76 = math.rsqrt %75 : vector<1x32xf32>
    %77 = vector.broadcast %76 : vector<1x32xf32> to vector<80x32xf32>
    %78 = arith.mulf %66, %77 : vector<80x32xf32>
    %cst_57 = arith.constant 0.000000e+00 : f32
    %79 = vector.broadcast %cst_57 : f32 to vector<80x32xf32>
    %80 = arith.cmpf ogt, %78, %79 : vector<80x32xf32>
    %81 = math.exp %78 : vector<80x32xf32>
    %cst_58 = arith.constant 1.000000e+00 : f32
    %82 = vector.broadcast %cst_58 : f32 to vector<80x32xf32>
    %83 = arith.subf %81, %82 : vector<80x32xf32>
    %84 = arith.select %80, %78, %83 : vector<80x32xi1>, vector<80x32xf32>
    %85 = arith.truncf %84 : vector<80x32xf32> to vector<80x32xbf16>
    %c0_59 = arith.constant 0 : index
    %c0_60 = arith.constant 0 : index
    %c0_61 = arith.constant 0 : index
    %86 = vector.load %arg5[%c0_59, %c0_60, %c0_61] : memref<1x80x32xbf16, #tpu.memory_space<vmem>>, vector<1x80x32xbf16>
    %87 = vector.shape_cast %86 : vector<1x80x32xbf16> to vector<80x32xbf16>
    %88 = vector.shape_cast %85 : vector<80x32xbf16> to vector<1x80x32xbf16>
    tpu.vector_store %arg5[%c0_59, %c0_60, %c0_61], %88 {strides = array<i32>} : memref<1x80x32xbf16, #tpu.memory_space<vmem>>, vector<1x80x32xbf16>,
    return
  }
  func.func @transform_0(%arg0: i32) -> (i32, i32, i32) {
    %c0_i32 = arith.constant 0 : i32
    %c0_i32_0 = arith.constant 0 : i32
    %c0_i32_1 = arith.constant 0 : i32
    return %arg0, %c0_i32, %c0_i32_0 : i32, i32, i32
  }
  func.func @transform_1(%arg0: i32) -> (i32, i32, i32) {
    %c0_i32 = arith.constant 0 : i32
    %c0_i32_0 = arith.constant 0 : i32
    %c0_i32_1 = arith.constant 0 : i32
    %c0_i32_2 = arith.constant 0 : i32
    return %c0_i32, %c0_i32_0, %c0_i32_1 : i32, i32, i32
  }
  func.func @transform_2(%arg0: i32) -> (i32, i32) {
    %c0_i32 = arith.constant 0 : i32
    %c0_i32_0 = arith.constant 0 : i32
    %c0_i32_1 = arith.constant 0 : i32
    return %c0_i32, %c0_i32_0 : i32, i32
  }
  func.func @transform_3(%arg0: i32) -> (i32, i32) {
    %c0_i32 = arith.constant 0 : i32
    %c0_i32_0 = arith.constant 0 : i32
    %c0_i32_1 = arith.constant 0 : i32
    return %c0_i32, %c0_i32_0 : i32, i32
  }
  func.func @transform_4(%arg0: i32) -> (i32, i32, i32) {
    %c0_i32 = arith.constant 0 : i32
    %c0_i32_0 = arith.constant 0 : i32
    %c0_i32_1 = arith.constant 0 : i32
    return %arg0, %c0_i32, %c0_i32_0 : i32, i32, i32
  }
}

module attributes {stable_mosaic.version = 11 : i64} {
  func.func @_add_elu_kernel(%arg0: i32, %arg1: memref<128x32xbf16, #tpu.memory_space<vmem>>, %arg2: memref<128x32xbf16, #tpu.memory_space<vmem>>, %arg3: memref<128x32xf32, #tpu.memory_space<vmem>>) attributes {dimension_semantics = [#tpu.dimension_semantics<parallel>], iteration_bounds = array<i64: 1>, scalar_prefetch = 0 : i64, scratch_operands = 0 : i64, tpu.core_type = #tpu.core_type<tc>, window_params = [{transform_indices = @transform_0, window_bounds = array<i64: 128, 32>}, {transform_indices = @transform_1, window_bounds = array<i64: 128, 32>}, {transform_indices = @transform_2, window_bounds = array<i64: 128, 32>}]} {
    %c0 = arith.constant 0 : index
    %c0_0 = arith.constant 0 : index
    %0 = vector.load %arg1[%c0, %c0_0] : memref<128x32xbf16, #tpu.memory_space<vmem>>, vector<128x32xbf16>
    %1 = arith.extf %0 : vector<128x32xbf16> to vector<128x32xf32>
    %c0_1 = arith.constant 0 : index
    %c0_2 = arith.constant 0 : index
    %2 = vector.load %arg2[%c0_1, %c0_2] : memref<128x32xbf16, #tpu.memory_space<vmem>>, vector<128x32xbf16>
    %3 = arith.extf %2 : vector<128x32xbf16> to vector<128x32xf32>
    %4 = arith.addf %1, %3 : vector<128x32xf32>
    %cst = arith.constant 0.000000e+00 : f32
    %5 = vector.broadcast %cst : f32 to vector<128x32xf32>
    %6 = arith.cmpf ogt, %4, %5 : vector<128x32xf32>
    %7 = math.exp %4 : vector<128x32xf32>
    %cst_3 = arith.constant 1.000000e+00 : f32
    %8 = vector.broadcast %cst_3 : f32 to vector<128x32xf32>
    %9 = arith.subf %7, %8 : vector<128x32xf32>
    %10 = arith.select %6, %4, %9 : vector<128x32xi1>, vector<128x32xf32>
    %c0_4 = arith.constant 0 : index
    %c0_5 = arith.constant 0 : index
    %11 = vector.load %arg3[%c0_4, %c0_5] : memref<128x32xf32, #tpu.memory_space<vmem>>, vector<128x32xf32>
    tpu.vector_store %arg3[%c0_4, %c0_5], %10 {strides = array<i32>} : memref<128x32xf32, #tpu.memory_space<vmem>>, vector<128x32xf32>,
    return
  }
  func.func @transform_0(%arg0: i32) -> (i32, i32) {
    %c0_i32 = arith.constant 0 : i32
    %c0_i32_0 = arith.constant 0 : i32
    return %arg0, %c0_i32 : i32, i32
  }
  func.func @transform_1(%arg0: i32) -> (i32, i32) {
    %c0_i32 = arith.constant 0 : i32
    %c0_i32_0 = arith.constant 0 : i32
    return %arg0, %c0_i32 : i32, i32
  }
  func.func @transform_2(%arg0: i32) -> (i32, i32) {
    %c0_i32 = arith.constant 0 : i32
    %c0_i32_0 = arith.constant 0 : i32
    return %arg0, %c0_i32 : i32, i32
  }
}

</mosaic_0001>

<bundles_post_ra>
// kernel: down_transition_forward.4
= control target key start
LH: loop header
LB: loop body
LE: loop exit
PB: predicated region body
PF: predicated region fallthrough
CT: control target
= control target key end

     0   :  { %s1841_s15 = smov 0   ;;  %s2253_s0 = inlined_call_operand.vmem [shape: bf16[2,4,90,4], index: 0, kind: input, shape index: {}]   ;;  %s2254_s1 = inlined_call_operand.vmem [shape: bf16[9,4,32], index: 1, kind: input, shape index: {}]   ;;  %s2255_s2 = inlined_call_operand.vmem [shape: f32[1,32], index: 2, kind: input, shape index: {}]   ;;  %s2256_s3 = inlined_call_operand.vmem [shape: f32[72,1], index: 3, kind: input, shape index: {}]   ;;  %s2257_s4 = inlined_call_operand.vmem [shape: bf16[2,72,32], index: 4, kind: output, shape index: {}]  }
   0x1 LB: > { %s1473_s16 = sadd.s32 4294967295, %s1813_s15   ;;  %p1477_p0 = scmp.ge.s32.totalorder %s1813_s15, 1  ;;  %s1813_s15 = sphi %s1841_s15, %s14_s15  }
   0x2   : > { %p162_p1 = scmp.lt.s32.totalorder %s1813_s15, 3 }
   0x4   : > { %p163_p2 = pnand %p1477_p0, %p162_p1 }
   0x5   : > { %p188_p3 = scmp.lt.s32.totalorder (!%p163_p2), %s1473_s16, 1 }
   0x6   : > { %166 = sbr.rel (%p163_p2) target bundleno = 436 (0x1b4), region = 36 }
   0xb   : > { %v1489_v0 = vld [vmem:[%s2254_s1 + $0x2] sm:$0x3]  ;;  %vm260_vm0 = vcmask 1041408   ;;  %v1532_v2 = vld [vmem:[%s2254_s1 + $0x4] sm:$0x3]  ;;  %s2259_s16 = smov (!%p188_p3, %s1473_s16), 1 }
   0xc   : > { %v262_v1 = vsel %vm260_vm0, %v1489_v0, 0  ;;  %v208_v3 = vld [vmem:[%s2254_s1] sm:$0x3]  ;;  %v464_v4 = vsel %vm260_vm0, %v1532_v2, 0  ;;  %v1567_v6 = vld [vmem:[%s2254_s1 + $0x6] sm:$0x3] }
   0xd   : > { %1766 = vmatpush.bf16.msra.mxu1 %v262_v1  ;;  %1767 = vmatpush.bf16.msra.mxu2 %v262_v1  ;;  %v336_v5 = vsel %vm260_vm0, %v208_v3, 0  ;;  %v559_v7 = vsel %vm260_vm0, %v1567_v6, 0  ;;  %v1598_v8 = vld [vmem:[%s2254_s1 + $0x8] sm:$0x3]  ;;  %s1769_s27 = smul.u32 192, %s2259_s16  ;;  %vm244_vm1 = vcmask 31744  }
   0xe   : > { %1768 = vmatpush.bf16.msra.mxu3 %v262_v1  ;;  %271 = vmatpush.bf16.msra.mxu0 %v262_v1  ;;  %v654_v9 = vsel %vm260_vm0, %v1598_v8, 0  ;;  %v1656_v16 = vld [vmem:[%s2254_s1 + $0xc] sm:$0x3]  ;;  %v1688_v18 = vld [vmem:[%s2254_s1 + $0xe] sm:$0x3]  ;;  %vm1112_vm3 = vcmask 1046528  }
   0xf   : > { %s1875_s30 = scalar_lea.vmem %s2253_s0, %s1769_s27  ;;  %v926_v17 = vsel %vm260_vm0, %v1656_v16, 0  ;;  %v1062_v19 = vsel %vm260_vm0, %v1688_v18, 0  ;;  %v1630_v20 = vld [vmem:[%s2254_s1 + $0xa] sm:$0x3]  ;;  %v1714_v21 = vld [vmem:[%s2254_s1 + $0x10] sm:$0x3] }
  0x10   : > { %v1736_v10 = vld [vmem:[%s1875_s30 + $0x38] sm:$0xff]  ;;  %v1737_v11 = vld [vmem:[%s1875_s30 + $0x40] sm:$0xff]  ;;  %v1488_v12 = vld [vmem:[%s1875_s30 + $0x50] sm:$0xf]  ;;  %v790_v22 = vsel %vm260_vm0, %v1630_v20, 0  ;;  %v1138_v23 = vsel %vm260_vm0, %v1714_v21, 0 }
  0x11   : > { %473 = vmatpush.bf16.msrb.mxu2 %v464_v4  ;;  %345 = vmatpush.bf16.msrb.mxu1 %v336_v5  ;;  %v238_v13 = vunpack.c.l.b16 %v1488_v12  ;;  %v1735_v14 = vld [vmem:[%s1875_s30 + $0x30] sm:$0xff]  ;;  %v1738_v24 = vld [vmem:[%s1875_s30 + $0x48] sm:$0xff]  ;;  %v1731_v25 = vld [vmem:[%s1875_s30] sm:$0xff]  ;;  %vm408_vm2 = vsmask.f32 7424  ;;  %vm1258_vm4 = vcmask 261120  }
  0x12   : > { %568 = vmatpush.bf16.msrb.mxu3 %v559_v7  ;;  %663 = vmatpush.bf16.msrb.mxu0 %v654_v9  ;;  %v1739_v26 = vld [vmem:[%s1875_s30] sm:$0xff]  ;;  %v1748_v27 = vld [vmem:[%s1875_s30 + $0x90] sm:$0xff]  ;;  %v1740_v29 = vld [vmem:[%s1875_s30 + $0x8] sm:$0xff]  ;;  %s1770_s9 = smul.u32 36, %s2259_s16  ;;  %vm1408_vm10 = vcmask 257024  }
  0x13   : > { %1507 = vmatmul.msk.bf16.vlgmr.msra.gmra.mxu1 %vm244_vm1, %v1736_v10  ;;  %1508 = vmatmul.msk.bf16.vlgmr.msra.gmra.mxu2 %vm244_vm1, %v1737_v11  ;;  %v243_v15 = vpack.c.b16 %v238_v13, %v238_v13  ;;  %v1744_v28 = vld [vmem:[%s1875_s30 + $0x60] sm:$0xff]  ;;  %v412_v30 = vshll.u32 %v1739_v26, 16  ;;  %v410_v31 = vshrl.u32 %v1739_v26, 16  ;;  %v417_v33 = vshll.u32 %v1740_v29, 16  ;;  %v1732_v36 = vld [vmem:[%s1875_s30 + $0x8] sm:$0xff]  ;;  %v1749_v38 = vld [vmem:[%s1875_s30 + $0x98] sm:$0xff] }
  0x14   : > { %1506 = vmatmul.msk.bf16.vlgmr.msra.gmra.mxu0 %vm244_vm1, %v1735_v14  ;;  %v1745_v39 = vld [vmem:[%s1875_s30 + $0x68] sm:$0xff]  ;;  %v1741_v40 = vld [vmem:[%s1875_s30 + $0x10] sm:$0xff]  ;;  %v421_v41 = vshrl.u32 %v1740_v29, 16  ;;  %v1750_v47 = vld [vmem:[%s1875_s30 + $0xa0] sm:$0xff]  ;;  %s2224_s12 = scalar_lea.vmem %s2257_s4, %s1770_s9 }
  0x15   : > { %1510 = vmatmul.msk.bf16.vlgmr.msra.gmra.mxu3 %vm244_vm1, %v243_v15  ;;  %935 = vmatpush.bf16.msra.mxu2 %v926_v17  ;;  %v414_v32 = vrot.slane %v412_v30, 1  ;;  %v419_v35 = vrot.slane %v417_v33, 1  ;;  %v425_v42 = vshll.u32 %v1741_v40, 16  ;;  %v1733_v45 = vld [vmem:[%s1875_s30 + $0x10] sm:$0xff]  ;;  %v1742_v49 = vld [vmem:[%s1875_s30 + $0x18] sm:$0xff]  ;;  %v429_v50 = vshrl.u32 %v1741_v40, 16 }
  0x16   : > { %1071 = vmatpush.bf16.msra.mxu3 %v1062_v19  ;;  %799 = vmatpush.bf16.msra.mxu1 %v790_v22  ;;  %v1746_v48 = vld [vmem:[%s1875_s30 + $0x70] sm:$0xff]  ;;  %v433_v51 = vshll.u32 %v1742_v49, 16  ;;  %v1734_v54 = vld [vmem:[%s1875_s30 + $0x18] sm:$0xff]  ;;  %v1751_v56 = vld [vmem:[%s1875_s30 + $0xa8] sm:$0xff]  ;;  %v437_v62 = vshrl.u32 %v1742_v49, 16 }
  0x17   : > { %1147 = vmatpush.bf16.msra.mxu0 %v1138_v23  ;;  %v415_v34 = vor.u32 %v414_v32, %v410_v31  ;;  %v423_v43 = vor.u32 %v421_v41, %v419_v35  ;;  %v427_v44 = vrot.slane %v425_v42, 1  ;;  %v1551_v57 = vld [vmem:[%s1875_s30 + $0x20] sm:$0xf]  ;;  %v1743_v58 = vld [vmem:[%s1875_s30 + $0x20] sm:$0x10]  ;;  %v1747_v59 = vld [vmem:[%s1875_s30 + $0x78] sm:$0xff] }
  0x18   : > { %v435_v53 = vrot.slane %v433_v51, 1  ;;  %v1552_v60 = vor.u32 %v1743_v58, %v1551_v57  ;;  %v207_v61 = vld [vmem:[%s1875_s30 + $0x20] sm:$0xf]  ;;  %v1597_v0 = vld [vmem:[%s1875_s30 + $0xb0] sm:$0xf]  ;;  %v1761_v13 = vld [vmem:[%s1875_s30 + $0x34] sm:$0xff] }
  0x19   : > { %v420_v37 = vsel %vm408_vm2, %v415_v34, %v419_v35  ;;  %v428_v46 = vsel %vm408_vm2, %v423_v43, %v427_v44  ;;  %v431_v52 = vor.u32 %v429_v50, %v427_v44  ;;  %v314_v1 = vunpack.c.l.b16 %v207_v61  ;;  %v1566_v2 = vld [vmem:[%s1875_s30 + $0x80] sm:$0xf]  ;;  %v1809_v12 = vld [vmem:[%s1875_s30 + $0x4] sm:$0xe]  ;;  %v1753_v14 = vld [vmem:[%s1875_s30 + $0x68] sm:$0xff] }
  0x1a   : > { %v441_v63 = vshll.u32 %v1552_v60, 16  ;;  %v439_v3 = vor.u32 %v437_v62, %v435_v53  ;;  %v632_v5 = vunpack.c.l.b16 %v1597_v0  ;;  %v537_v6 = vunpack.c.l.b16 %v1566_v2  ;;  %v1752_v9 = vld [vmem:[%s1875_s30 + $0x60] sm:$0xff]  ;;  %v1808_v17 = vld [vmem:[%s1875_s30 + $0x4] sm:$0xf0]  ;;  %v1972_v51 = vld [vmem:[%s1875_s30 + $0x14] sm:$0xff] }
  0x1b   : > { %v436_v55 = vsel %vm408_vm2, %v431_v52, %v435_v53  ;;  %v319_v7 = vpack.c.b16 %v314_v1, %v314_v1  ;;  %v738_v15 = vshll.u32 %v1752_v9, 16  ;;  %v834_v16 = vld [vmem:[%s1875_s30 + $0x4] sm:$0xff]   ;;  %v1762_v18 = vld [vmem:[%s1875_s30 + $0x3c] sm:$0xff]  ;;  %v1010_v19 = vshll.u32 %v1761_v13, 16  ;;  %v1764_v1 = vld [vmem:[%s1875_s30 + $0x4c] sm:$0xff] }
  0x1c   : > { %v443_v4 = vrot.slane %v441_v63, 1  ;;  %v637_v10 = vpack.c.b16 %v632_v5, %v632_v5  ;;  %v542_v11 = vpack.c.b16 %v537_v6, %v537_v6  ;;  %v736_v20 = vshrl.u32 %v1752_v9, 16  ;;  %v1763_v43 = vld [vmem:[%s1875_s30 + $0x44] sm:$0xff]  ;;  %v1755_v0 = vld [vmem:[%s1875_s30 + $0x78] sm:$0xff]  ;;  %v1185_v6 = vld [vmem:[%s2256_s3 + $0x10] sm:$0xff] }
  0x1d   : > { %v740_v21 = vrot.slane %v738_v15, 1  ;;  %v743_v22 = vshll.u32 %v1753_v14, 16  ;;  %v1810_v23 = vor.u32 %v1809_v12, %v1808_v17  ;;  %v1012_v26 = vrot.slane %v1010_v19, 1  ;;  %v1184_v63 = vld [vmem:[%s2256_s3 + $0x8] sm:$0xff]  ;;  %v1994_v9 = vld [vmem:[%s1875_s30 + $0x1c] sm:$0xff] }
  0x1e   : > { %v444_v8 = vsel %vm408_vm2, %v439_v3, %v443_v4  ;;  %v874_v40 = vshll.u32 %v834_v16, 16  ;;  %v747_v41 = vshrl.u32 %v1753_v14, 16  ;;  %v872_v44 = vshrl.u32 %v834_v16, 16 }
  0x1f   : > { %v741_v29 = vor.u32 %v740_v21, %v736_v20  ;;  %v745_v30 = vrot.slane %v743_v22, 1  ;;  %v1113_v31 = vrot.slane %v1810_v23, 1  ;;  %v1019_v49 = vshrl.u32 %v1762_v18, 16  ;;  %v1649_v20 = vld [vmem:[%s1875_s30 + $0x80] sm:$0xf] }
  0x20   : > { %v1023_v50 = vshll.u32 %v1763_v43, 16  ;;  %v759_v3 = vshll.u32 %v1755_v0, 16  ;;  %v887_v5 = vshll.u32 %v1972_v51, 16  ;;  %v1118_v14 = vrot.slane %v1994_v9, 1  ;;  %v1756_v21 = vld [vmem:[%s1875_s30 + $0x80] sm:$0x10] }
  0x21   : > { %v749_v52 = vor.u32 %v747_v41, %v745_v30 }
  0x22   : > { %v1025_v58 = vrot.slane %v1023_v50, 1 }
  0x23   : > { %1509 = vmatmul.msk.bf16.gmra.mxu2 %vm244_vm1, %v1738_v24  ;;  %1527 = vmatmul.msk.bf16.vlgmr.msrb.gmra.mxu1 %vm244_vm1, %v1731_v25  ;;  %v445_v24 = vshrl.u32 %v1552_v60, 16  ;;  %v1008_v25 = vshrl.u32 %v1761_v13, 16  ;;  %v889_v13 = vrot.slane %v887_v5, 1 }
  0x24   : > { %1615 = vmatmul.msk.bf16.vlgmr.msrb.gmra.mxu0 %vm244_vm1, %v1748_v27  ;;  %v1015_v27 = vshll.u32 %v1762_v18, 16 }
  0x25   : > { %1584 = vmatmul.msk.bf16.vlgmr.msrb.gmra.mxu3 %vm244_vm1, %v1744_v28  ;;  %v1955_v28 = vld [vmem:[%s1875_s30 + $0xc] sm:$0xff]  ;;  %v447_v33 = vor.u32 %v445_v24, %v443_v4  ;;  %v1013_v34 = vor.u32 %v1012_v26, %v1008_v25  ;;  %v1650_v25 = vor.u32 %v1756_v21, %v1649_v20  ;;  %v1186_v26 = vld [vmem:[%s2256_s3 + $0x18] sm:$0xff] }
  0x26   : > { %v1114_v32 = vrot.slane %v1955_v28, 1  ;;  %v1017_v35 = vrot.slane %v1015_v27, 1  ;;  %v883_v4 = vshrl.u32 %v1955_v28, 16  ;;  %v1707_v27 = vld [vmem:[%s1875_s30 + $0x54] sm:$0xf] }
  0x28   : > { %v1021_v57 = vor.u32 %v1019_v49, %v1017_v35 }
  0x2a   : > { %v1026_v62 = vsel %vm408_vm2, %v1021_v57, %v1025_v58 }
  0x33   : > { %1528 = vmatmul.msk.bf16.gmra.mxu1 %vm244_vm1, %v1732_v36  ;;  %1553 = vmatmul.msk.bf16.vlgmr.msrb.gmra.mxu2 %vm244_vm1, %v420_v37  ;;  %v746_v36 = vsel %vm408_vm2, %v741_v29, %v745_v30  ;;  %v1115_v37 = vsel %vm1112_vm3, %v1113_v31, %v1114_v32  ;;  %v763_v30 = vshrl.u32 %v1755_v0, 16  ;;  %v767_v31 = vshll.u32 %v1650_v25, 16 }
  0x34   : > { %1616 = vmatmul.msk.bf16.gmra.mxu0 %vm244_vm1, %v1749_v38  ;;  %v1018_v38 = vsel %vm408_vm2, %v1013_v34, %v1017_v35  ;;  %v891_v34 = vshrl.u32 %v1972_v51, 16  ;;  %v895_v35 = vshll.u32 %v1994_v9, 16 }
  0x35   : > { %1585 = vmatmul.msk.bf16.gmra.mxu3 %vm244_vm1, %v1745_v39  ;;  %v1754_v39 = vld [vmem:[%s1875_s30 + $0x70] sm:$0xff] }
  0x36   : > { %v751_v42 = vshll.u32 %v1754_v39, 16  ;;  %v755_v2 = vshrl.u32 %v1754_v39, 16 }
  0x38   : > { %v753_v53 = vrot.slane %v751_v42, 1 }
  0x43   : > { %1529 = vmatmul.msk.bf16.gmra.mxu1 %vm244_vm1, %v1733_v45  ;;  %1554 = vmatmul.msk.bf16.gmra.mxu2 %vm244_vm1, %v428_v46  ;;  %v876_v45 = vrot.slane %v874_v40, 1  ;;  %v879_v46 = vshll.u32 %v1955_v28, 16  ;;  %v1765_v28 = vld [vmem:[%s1875_s30 + $0x54] sm:$0x10]  ;;  %v1035_v40 = vshrl.u32 %v1764_v1, 16 }
  0x44   : > { %1617 = vmatmul.msk.bf16.gmra.mxu0 %vm244_vm1, %v1750_v47  ;;  %v1183_v47 = vld [vmem:[%s2256_s3] sm:$0xff] }
  0x45   : > { %1586 = vmatmul.msk.bf16.gmra.mxu3 %vm244_vm1, %v1746_v48  ;;  %v1815_v48 = vmov 0  }
  0x46   : > { %1780 = vset.pattern.permute.xlu0 %v1815_v48  ;;  %1781 = vset.pattern.permute.xlu1 %v1815_v48 }
  0x47   : > { %1206 = vperm.xlu0 %1780, %v1183_v47   ;;  %1782 = vset.pattern.permute.xlu2 %v1815_v48 }
  0x48   : > { %1216 = vperm.xlu1 %1781, %v1185_v6  }
  0x4f   : > { %1211 = vperm.xlu0 %1780, %v1184_v63  }
  0x50   : > { %1221 = vperm.xlu1 %1781, %v1186_v26  }
  0x53   : > { %1530 = vmatmul.msk.bf16.gmra.mxu1 %vm244_vm1, %v1734_v54  ;;  %1555 = vmatmul.msk.bf16.gmra.mxu2 %vm244_vm1, %v436_v55  ;;  %v877_v54 = vor.u32 %v876_v45, %v872_v44  ;;  %v881_v55 = vrot.slane %v879_v46, 1  ;;  %v769_v44 = vrot.slane %v767_v31, 1  ;;  %v893_v45 = vor.u32 %v891_v34, %v889_v13 }
  0x54   : > { %1618 = vmatmul.msk.bf16.gmra.mxu0 %vm244_vm1, %v1751_v56  ;;  %v1116_v56 = vrot.slane %v1972_v51, 1  ;;  %v897_v46 = vrot.slane %v895_v35, 1 }
  0x55   : > { %1587 = vmatmul.msk.bf16.gmra.mxu3 %vm244_vm1, %v1747_v59  ;;  %v754_v59 = vsel %vm408_vm2, %v749_v52, %v753_v53  ;;  %v882_v60 = vsel %vm408_vm2, %v877_v54, %v881_v55  ;;  %v885_v12 = vor.u32 %v883_v4, %v881_v55  ;;  %v771_v4 = vshrl.u32 %v1650_v25, 16 }
  0x56   : > { %v1117_v61 = vsel %vm1112_vm3, %v1114_v32, %v1116_v56  ;;  %v1119_v23 = vsel %vm1112_vm3, %v1116_v56, %v1118_v14  ;;  %v1708_v32 = vor.u32 %v1765_v28, %v1707_v27 }
  0x57   : > { %v890_v19 = vsel %vm408_vm2, %v885_v12, %v889_v13 }
  0x58   : > { %v1039_v41 = vshll.u32 %v1708_v32, 16 }
  0x5a   : > { %v1041_v50 = vrot.slane %v1039_v41, 1 }
  0x63   : > { %1531 = vmatmul.msk.bf16.gmra.mxu1 %vm244_vm1, %v319_v7  ;;  %1556 = vmatmul.msk.bf16.gmra.mxu2 %vm244_vm1, %v444_v8  ;;  %v1027_v7 = vshrl.u32 %v1763_v43, 16  ;;  %v1031_v8 = vshll.u32 %v1764_v1, 16 }
  0x64   : > { %1619 = vmatmul.msk.bf16.gmra.mxu0 %vm244_vm1, %v637_v10  ;;  %v757_v10 = vor.u32 %v755_v2, %v753_v53  ;;  %v898_v53 = vsel %vm408_vm2, %v893_v45, %v897_v46 }
  0x65   : > { %1588 = vmatmul.msk.bf16.gmra.mxu3 %vm244_vm1, %v542_v11  ;;  %v761_v11 = vrot.slane %v759_v3, 1  ;;  %v1029_v15 = vor.u32 %v1027_v7, %v1025_v58  ;;  %v1033_v16 = vrot.slane %v1031_v8, 1  ;;  %v1190_v3 = vld [vmem:[%s2256_s3 + $0x38] sm:$0xff]  ;;  %v1043_v8 = vshrl.u32 %v1708_v32, 16 }
  0x66   : > { %1241 = vperm.xlu1 %1781, %v1190_v3  }
  0x67   : > { %v762_v18 = vsel %vm408_vm2, %v757_v10, %v761_v11  ;;  %v1034_v24 = vsel %vm408_vm2, %v1029_v15, %v1033_v16  ;;  %v765_v43 = vor.u32 %v763_v30, %v761_v11  ;;  %v1037_v49 = vor.u32 %v1035_v40, %v1033_v16  ;;  %v1187_v15 = vld [vmem:[%s2256_s3 + $0x20] sm:$0xff] }
  0x68   : > { %v773_v10 = vor.u32 %v771_v4, %v769_v44  ;;  %v1045_v16 = vor.u32 %v1043_v8, %v1041_v50  ;;  %1226 = vperm.xlu2 %1782, %v1187_v15  }
  0x69   : > { %v770_v52 = vsel %vm408_vm2, %v765_v43, %v769_v44  ;;  %v1042_v58 = vsel %vm408_vm2, %v1037_v49, %v1041_v50 }
  0x73   : > { %1557 = vmatmul.msk.bf16.gmra.mxu2 %vm244_vm1, %v447_v33  ;;  %1651 = vmatmul.msk.bf16.vlgmr.msra.gmra.mxu1 %vm244_vm1, %v746_v36  ;;  %v1671_v36 = vld [vmem:[%s1875_s30 + $0x24] sm:$0xf] }
  0x74   : > { %1715 = vmatmul.msk.bf16.vlgmr.msra.gmra.mxu0 %vm244_vm1, %v1115_v37  ;;  %v1760_v37 = vld [vmem:[%s1875_s30 + $0x24] sm:$0x10] }
  0x75   : > { %1709 = vmatmul.msk.bf16.vlgmr.msra.gmra.mxu3 %vm244_vm1, %v1018_v38  ;;  %v2024_v42 = vor.u32 %v1760_v37, %v1671_v36 }
  0x77   : > { %v1120_v47 = vrot.slane %v2024_v42, 1  ;;  %v903_v63 = vshll.u32 %v2024_v42, 16  ;;  %v907_v25 = vshrl.u32 %v2024_v42, 16 }
  0x79   : > { %v1121_v57 = vsel %vm1112_vm3, %v1118_v14, %v1120_v47  ;;  %v905_v6 = vrot.slane %v903_v63, 1 }
  0x7b   : > { %v909_v30 = vor.u32 %v907_v25, %v905_v6 }
  0x83   : > { %1652 = vmatmul.msk.bf16.gmra.mxu1 %vm244_vm1, %v754_v59  ;;  %1673 = vmatmul.msk.bf16.vlgmr.msra.gmra.mxu2 %vm244_vm1, %v882_v60  ;;  %v1189_v59 = vld [vmem:[%s2256_s3 + $0x30] sm:$0xff] }
  0x84   : > { %1716 = vmatmul.msk.bf16.gmra.mxu0 %vm244_vm1, %v1117_v61  ;;  %1236 = vperm.xlu0 %1780, %v1189_v59  }
  0x85   : > { %1710 = vmatmul.msk.bf16.gmra.mxu3 %vm244_vm1, %v1026_v62  ;;  %v899_v62 = vshrl.u32 %v1994_v9, 16 }
  0x87   : > { %v901_v5 = vor.u32 %v899_v62, %v897_v46 }
  0x89   : > { %v906_v12 = vsel %vm408_vm2, %v901_v5, %v905_v6 }
  0x90   : > { %v1997_v17 = vpop.f32.mrf.mxu1 }
  0x91   : > { %v273_v22 = vpop.f32.mrf.mxu0 }
  0x93   : > { %1653 = vmatmul.msk.bf16.gmra.mxu1 %vm244_vm1, %v762_v18  ;;  %1674 = vmatmul.msk.bf16.gmra.mxu2 %vm244_vm1, %v890_v19 }
  0x94   : > { %1717 = vmatmul.msk.bf16.gmra.mxu0 %vm244_vm1, %v1119_v23 }
  0x95   : > { %1711 = vmatmul.msk.bf16.gmra.mxu3 %vm244_vm1, %v1034_v24  ;;  %v1188_v24 = vld [vmem:[%s2256_s3 + $0x28] sm:$0xff] }
  0x96   : > { %v2013_v29 = vpop.f32.mrf.mxu2  ;;  %1231 = vperm.xlu2 %1782, %v1188_v24  }
  0x98   : > { %v2016_v33 = vpop.f32.mrf.mxu1  ;;  %v2022_v38 = vpop.f32.mrf.mxu3 }
  0x99   : > { %v275_v39 = vpop.f32.mrf.mxu0 }
  0x9e   : > { %v2027_v48 = vpop.f32.mrf.mxu2 }
  0xa0   : > { %v347_v51 = vpop.f32.mrf.mxu1  ;;  %v295_v55 = vpop.f32.mrf.mxu3 }
  0xa1   : > { %v348_v54 = vadd.f32 %v347_v51, %v273_v22  ;;  %v665_v56 = vpop.f32.mrf.mxu0 }
  0xa3   : > { %1654 = vmatmul.msk.bf16.gmra.mxu1 %vm244_vm1, %v770_v52  ;;  %1675 = vmatmul.msk.bf16.gmra.mxu2 %vm244_vm1, %v898_v53 }
  0xa4   : > { %1718 = vmatmul.msk.bf16.gmra.mxu0 %vm244_vm1, %v1121_v57 }
  0xa5   : > { %1712 = vmatmul.msk.bf16.gmra.mxu3 %vm244_vm1, %v1042_v58 }
  0xa6   : > { %v2039_v60 = vpop.f32.mrf.mxu2 }
  0xa8   : > { %v349_v61 = vpop.f32.mrf.mxu1  ;;  %v570_v1 = vpop.f32.mrf.mxu3 }
  0xa9   : > { %v350_v0 = vadd.f32 %v349_v61, %v275_v39  ;;  %v667_v2 = vpop.f32.mrf.mxu0 }
  0xae   : > { %v290_v7 = vpop.f32.mrf.mxu2 }
  0xb0   : > { %v352_v11 = vpop.f32.mrf.mxu1  ;;  %v572_v13 = vpop.f32.mrf.mxu3 }
  0xb1   : > { %v353_v9 = vadd.f32 %v352_v11, %v1997_v17  ;;  %v670_v14 = vpop.f32.mrf.mxu0 }
  0xb3   : > { %1655 = vmatmul.msk.bf16.gmra.mxu1 %vm244_vm1, %v773_v10  ;;  %1676 = vmatmul.msk.bf16.gmra.mxu2 %vm244_vm1, %v906_v12 }
  0xb4   : > { %1719 = vmatmul.msk.bf16.gmra.mxu0 %vm244_vm1, %v1120_v47 }
  0xb5   : > { %1713 = vmatmul.msk.bf16.gmra.mxu3 %vm244_vm1, %v1045_v16 }
  0xb6   : > { %v475_v18 = vpop.f32.mrf.mxu2 }
  0xb7   : > { %v499_v19 = vadd.f32 %v475_v18, %v348_v54 }
  0xb8   : > { %v354_v20 = vpop.f32.mrf.mxu1  ;;  %v575_v22 = vpop.f32.mrf.mxu3 }
  0xb9   : > { %v594_v17 = vadd.f32 %v570_v1, %v499_v19  ;;  %v355_v21 = vadd.f32 %v354_v20, %v2016_v33  ;;  %v672_v23 = vpop.f32.mrf.mxu0  ;;  %v1191_v33 = vld [vmem:[%s2256_s3 + $0x40] sm:$0xff] }
  0xba   : > { %1246 = vperm.xlu2 %1782, %v1191_v33  }
  0xbb   : > { %v689_v26 = vadd.f32 %v665_v56, %v594_v17 }
  0xbe   : > { %v477_v27 = vpop.f32.mrf.mxu2 }
  0xbf   : > { %v500_v28 = vadd.f32 %v477_v27, %v350_v0 }
  0xc0   : > { %v357_v31 = vpop.f32.mrf.mxu1  ;;  %v577_v35 = vpop.f32.mrf.mxu3 }
  0xc1   : > { %v595_v32 = vadd.f32 %v572_v13, %v500_v28  ;;  %v358_v34 = vadd.f32 %v357_v31, %v2013_v29  ;;  %v675_v36 = vpop.f32.mrf.mxu0 }
  0xc3   : > { %1677 = vmatmul.msk.bf16.gmra.mxu2 %vm244_vm1, %v909_v30  ;;  %v690_v37 = vadd.f32 %v667_v2, %v595_v32 }
  0xc6   : > { %v480_v39 = vpop.f32.mrf.mxu2 }
  0xc7   : > { %v501_v40 = vadd.f32 %v480_v39, %v353_v9 }
  0xc8   : > { %v359_v41 = vpop.f32.mrf.mxu1  ;;  %v580_v44 = vpop.f32.mrf.mxu3 }
  0xc9   : > { %v596_v42 = vadd.f32 %v575_v22, %v501_v40  ;;  %v360_v43 = vadd.f32 %v359_v41, %v2027_v48  ;;  %v677_v45 = vpop.f32.mrf.mxu0  ;;  %v2083_v41 = vpop.permute.xlu0 %1206 }
  0xcb   : > { %v2067_v46 = vadd.f32 %v670_v14, %v596_v42 }
  0xce   : > { %v482_v29 = vpop.f32.mrf.mxu2 }
  0xcf   : > { %v502_v47 = vadd.f32 %v482_v29, %v355_v21 }
  0xd0   : > { %v362_v49 = vpop.f32.mrf.mxu1  ;;  %v582_v52 = vpop.f32.mrf.mxu3 }
  0xd1   : > { %v597_v50 = vadd.f32 %v577_v35, %v502_v47  ;;  %v363_v51 = vadd.f32 %v362_v49, %v2039_v60  ;;  %v680_v53 = vpop.f32.mrf.mxu0 }
  0xd3   : > { %v2070_v54 = vadd.f32 %v672_v23, %v597_v50 }
  0xd6   : > { %v485_v55 = vpop.f32.mrf.mxu2 }
  0xd7   : > { %v503_v56 = vadd.f32 %v485_v55, %v358_v34 }
  0xd8   : > { %v364_v57 = vpop.f32.mrf.mxu1  ;;  %v585_v48 = vpop.f32.mrf.mxu3 }
  0xd9   : > { %v598_v58 = vadd.f32 %v580_v44, %v503_v56  ;;  %v365_v59 = vadd.f32 %v364_v57, %v290_v7  ;;  %v682_v61 = vpop.f32.mrf.mxu0 }
  0xdb   : > { %v2072_v62 = vadd.f32 %v675_v36, %v598_v58 }
  0xde   : > { %v487_v63 = vpop.f32.mrf.mxu2 }
  0xdf   : > { %v504_v0 = vadd.f32 %v487_v63, %v360_v43 }
  0xe0   : > { %v367_v1 = vpop.f32.mrf.mxu1  ;;  %v587_v60 = vpop.f32.mrf.mxu3 }
  0xe1   : > { %v599_v2 = vadd.f32 %v582_v52, %v504_v0  ;;  %v368_v3 = vadd.f32 %v367_v1, %v2022_v38  ;;  %v685_v4 = vpop.f32.mrf.mxu0  ;;  %v2093_v52 = vpop.permute.xlu0 %1211 }
  0xe3   : > { %v2075_v5 = vadd.f32 %v677_v45, %v599_v2 }
  0xe6   : > { %v490_v6 = vpop.f32.mrf.mxu2 }
  0xe7   : > { %v505_v8 = vadd.f32 %v490_v6, %v363_v51 }
  0xe8   : > { %v369_v10 = vpop.f32.mrf.mxu1  ;;  %v590_v12 = vpop.f32.mrf.mxu3 }
  0xe9   : > { %v600_v11 = vadd.f32 %v585_v48, %v505_v8  ;;  %v687_v7 = vpop.f32.mrf.mxu0 }
  0xeb   : > { %v2077_v9 = vadd.f32 %v680_v53, %v600_v11 }
  0xee   : > { %v492_v13 = vpop.f32.mrf.mxu2 }
  0xef   : > { %v506_v14 = vadd.f32 %v492_v13, %v365_v59 }
  0xf0   : > { %v801_v15 = vpop.f32.mrf.mxu1  ;;  %v592_v19 = vpop.f32.mrf.mxu3 }
  0xf1   : > { %v601_v16 = vadd.f32 %v587_v60, %v506_v14  ;;  %v825_v18 = vadd.f32 %v801_v15, %v689_v26  ;;  %v1149_v20 = vpop.f32.mrf.mxu0 }
  0xf3   : > { %v2079_v38 = vadd.f32 %v682_v61, %v601_v16 }
  0xf6   : > { %v495_v17 = vpop.f32.mrf.mxu2 }
  0xf7   : > { %v507_v21 = vadd.f32 %v495_v17, %v368_v3  ;;  %v2105_v3 = vpop.permute.xlu1 %1216 }
  0xf8   : > { %v803_v22 = vpop.f32.mrf.mxu1  ;;  %v1073_v25 = vpop.f32.mrf.mxu3 }
  0xf9   : > { %v602_v23 = vadd.f32 %v590_v12, %v507_v21  ;;  %v826_v24 = vadd.f32 %v803_v22, %v690_v37  ;;  %v1151_v27 = vpop.f32.mrf.mxu0  ;;  %v2088_v37 = vld [vmem:[%s2255_s2] ss:$0 sm:$0xff] }
  0xfb   : > { %v2081_v28 = vadd.f32 %v685_v4, %v602_v23 }
  0xfe   : > { %v497_v30 = vpop.f32.mrf.mxu2 }
  0xff   : > { %v2114_v19 = vpop.permute.xlu1 %1221 }
 0x100   : > { %v806_v31 = vpop.f32.mrf.mxu1  ;;  %v1075_v32 = vpop.f32.mrf.mxu3 }
 0x101   : > { %v1154_v34 = vpop.f32.mrf.mxu0  ;;  %v827_v53 = vadd.f32 %v806_v31, %v2067_v46 }
 0x106   : > { %v937_v35 = vpop.f32.mrf.mxu2 }
 0x107   : > { %v961_v36 = vadd.f32 %v937_v35, %v825_v18 }
 0x108   : > { %v808_v26 = vpop.f32.mrf.mxu1  ;;  %v1078_v39 = vpop.f32.mrf.mxu3 }
 0x109   : > { %v1097_v33 = vadd.f32 %v1073_v25, %v961_v36  ;;  %v1156_v40 = vpop.f32.mrf.mxu0  ;;  %v828_v4 = vadd.f32 %v808_v26, %v2070_v54 }
 0x10b   : > { %v1173_v42 = vadd.f32 %v1149_v20, %v1097_v33 }
 0x10d   : > { %v2091_v29 = vadd.f32 %v2088_v37, %v1173_v42 }
 0x10e   : > { %v939_v43 = vpop.f32.mrf.mxu2 }
 0x10f   : > { %v962_v44 = vadd.f32 %v939_v43, %v826_v24  ;;  %v1249_v55 = vmul.f32 %v2083_v41, %v2091_v29 }
 0x110   : > { %v811_v45 = vpop.f32.mrf.mxu1  ;;  %v1080_v49 = vpop.f32.mrf.mxu3 }
 0x111   : > { %v1098_v47 = vadd.f32 %v1075_v32, %v962_v44  ;;  %v1159_v50 = vpop.f32.mrf.mxu0  ;;  %v1259_v61 = vsel %vm1258_vm4, %v1249_v55, 0.0  ;;  %v829_v54 = vadd.f32 %v811_v45, %v2072_v62  ;;  %v2123_v32 = vpop.permute.xlu2 %1226 }
 0x113   : > { %v1174_v51 = vadd.f32 %v1151_v27, %v1098_v47 }
 0x115   : > { %v2099_v56 = vadd.f32 %v2088_v37, %v1174_v51 }
 0x116   : > { %v942_v57 = vpop.f32.mrf.mxu2 }
 0x117   : > { %v1250_v58 = vmul.f32 %v2093_v52, %v2099_v56  ;;  %v963_v59 = vadd.f32 %v942_v57, %v827_v53 }
 0x118   : > { %v813_v48 = vpop.f32.mrf.mxu1  ;;  %v1083_v1 = vpop.f32.mrf.mxu3 }
 0x119   : > { %v1260_v63 = vsel %vm1258_vm4, %v1250_v58, 0.0  ;;  %v1099_v0 = vadd.f32 %v1078_v39, %v963_v59  ;;  %v1161_v46 = vpop.f32.mrf.mxu0  ;;  %v830_v62 = vadd.f32 %v813_v48, %v2075_v5 }
 0x11a   : > { %v1261_v2 = vadd.f32 %v1260_v63, %v1259_v61 }
 0x11b   : > { %v1175_v60 = vadd.f32 %v1154_v34, %v1099_v0 }
 0x11d   : > { %v2109_v6 = vadd.f32 %v2088_v37, %v1175_v60 }
 0x11e   : > { %v944_v8 = vpop.f32.mrf.mxu2 }
 0x11f   : > { %v1251_v10 = vmul.f32 %v2105_v3, %v2109_v6  ;;  %v964_v11 = vadd.f32 %v944_v8, %v828_v4 }
 0x120   : > { %v816_v12 = vpop.f32.mrf.mxu1  ;;  %v1085_v14 = vpop.f32.mrf.mxu3 }
 0x121   : > { %v1262_v7 = vsel %vm1258_vm4, %v1251_v10, 0.0  ;;  %v1100_v13 = vadd.f32 %v1080_v49, %v964_v11  ;;  %v1164_v15 = vpop.f32.mrf.mxu0  ;;  %v2129_v49 = vpop.permute.xlu2 %1231 }
 0x122   : > { %v1263_v16 = vadd.f32 %v1262_v7, %v1261_v2  ;;  %v2137_v2 = vpop.permute.xlu0 %1236 }
 0x123   : > { %v1176_v18 = vadd.f32 %v1156_v40, %v1100_v13 }
 0x125   : > { %v2118_v20 = vadd.f32 %v2088_v37, %v1176_v18 }
 0x126   : > { %v947_v17 = vpop.f32.mrf.mxu2 }
 0x127   : > { %v1252_v21 = vmul.f32 %v2114_v19, %v2118_v20  ;;  %v965_v22 = vadd.f32 %v947_v17, %v829_v54 }
 0x128   : > { %v818_v23 = vpop.f32.mrf.mxu1  ;;  %v1088_v27 = vpop.f32.mrf.mxu3 }
 0x129   : > { %v1264_v24 = vsel %vm1258_vm4, %v1252_v21, 0.0  ;;  %v1101_v25 = vadd.f32 %v1083_v1, %v965_v22  ;;  %v1166_v30 = vpop.f32.mrf.mxu0  ;;  %v832_v1 = vadd.f32 %v818_v23, %v2079_v38 }
 0x12a   : > { %v1265_v31 = vadd.f32 %v1264_v24, %v1263_v16  ;;  %v1247_v24 = vpop.permute.xlu2 %1246 }
 0x12b   : > { %v1177_v34 = vadd.f32 %v1159_v50, %v1101_v25  ;;  %v831_v50 = vadd.f32 %v816_v12, %v2077_v9 }
 0x12d   : > { %v1199_v35 = vadd.f32 %v2088_v37, %v1177_v34 }
 0x12e   : > { %v949_v36 = vpop.f32.mrf.mxu2 }
 0x12f   : > { %v1253_v26 = vmul.f32 %v2123_v32, %v1199_v35  ;;  %v966_v33 = vadd.f32 %v949_v36, %v830_v62 }
 0x130   : > { %v821_v39 = vpop.f32.mrf.mxu1  ;;  %v1090_v43 = vpop.f32.mrf.mxu3 }
 0x131   : > { %v1266_v40 = vsel %vm1258_vm4, %v1253_v26, 0.0  ;;  %v1102_v42 = vadd.f32 %v1085_v14, %v966_v33  ;;  %v1169_v44 = vpop.f32.mrf.mxu0  ;;  %v833_v13 = vadd.f32 %v821_v39, %v2081_v28 }
 0x132   : > { %v1267_v45 = vadd.f32 %v1266_v40, %v1265_v31 }
 0x133   : > { %v1178_v47 = vadd.f32 %v1161_v46, %v1102_v42 }
 0x135   : > { %v1200_v5 = vadd.f32 %v2088_v37, %v1178_v47 }
 0x136   : > { %v952_v51 = vpop.f32.mrf.mxu2 }
 0x137   : > { %v1254_v53 = vmul.f32 %v2129_v49, %v1200_v5  ;;  %v967_v55 = vadd.f32 %v952_v51, %v831_v50 }
 0x138   : > { %v823_v57 = vpop.f32.mrf.mxu1  ;;  %v1093_v48 = vpop.f32.mrf.mxu3 }
 0x139   : > { %v1268_v58 = vsel %vm1258_vm4, %v1254_v53, 0.0  ;;  %v1103_v59 = vadd.f32 %v1088_v27, %v967_v55  ;;  %v1171_v61 = vpop.f32.mrf.mxu0 }
 0x13a   : > { %v1269_v63 = vadd.f32 %v1268_v58, %v1267_v45 }
 0x13b   : > { %v1179_v0 = vadd.f32 %v1164_v15, %v1103_v59  ;;  %v1242_v15 = vpop.permute.xlu1 %1241 }
 0x13d   : > { %v1201_v46 = vadd.f32 %v2088_v37, %v1179_v0 }
 0x13e   : > { %v954_v9 = vpop.f32.mrf.mxu2 }
 0x13f   : > { %v1255_v60 = vmul.f32 %v2137_v2, %v1201_v46  ;;  %v968_v4 = vadd.f32 %v954_v9, %v832_v1 }
 0x140   : > { %v1095_v11 = vpop.f32.mrf.mxu3 }
 0x141   : > { %v1270_v8 = vsel %vm1258_vm4, %v1255_v60, 0.0  ;;  %v1104_v10 = vadd.f32 %v1090_v43, %v968_v4 }
 0x142   : > { %v1271_v12 = vadd.f32 %v1270_v8, %v1269_v63 }
 0x143   : > { %v1180_v7 = vadd.f32 %v1166_v30, %v1104_v10 }
 0x145   : > { %v1202_v14 = vadd.f32 %v2088_v37, %v1180_v7 }
 0x146   : > { %v957_v38 = vpop.f32.mrf.mxu2 }
 0x147   : > { %v1256_v16 = vmul.f32 %v1242_v15, %v1202_v14  ;;  %v969_v18 = vadd.f32 %v957_v38, %v833_v13 }
 0x149   : > { %v1272_v54 = vsel %vm1258_vm4, %v1256_v16, 0.0  ;;  %v1105_v17 = vadd.f32 %v1093_v48, %v969_v18 }
 0x14a   : > { %v1273_v21 = vadd.f32 %v1272_v54, %v1271_v12 }
 0x14b   : > { %v1181_v22 = vadd.f32 %v1169_v44, %v1105_v17 }
 0x14d   : > { %v1203_v23 = vadd.f32 %v2088_v37, %v1181_v22 }
 0x14e   : > { %v959_v25 = vpop.f32.mrf.mxu2 }
 0x14f   : > { %v1257_v27 = vmul.f32 %v1247_v24, %v1203_v23 }
 0x151   : > { %v1274_v30 = vsel %vm1258_vm4, %v1257_v27, 0.0 }
 0x152   : > { %v1275_v31 = vadd.f32 %v1274_v30, %v1273_v21 }
 0x154   : > { %v1276_v28 = vrot.slane %v1275_v31, 4 }
 0x156   : > { %v1277_v34 = vadd.f32 %v1276_v28, %v1275_v31 }
 0x158   : > { %v1278_v62 = vrot.slane %v1277_v34, 2 }
 0x15a   : > { %v1279_v36 = vadd.f32 %v1278_v62, %v1277_v34 }
 0x15c   : > { %v1280_v26 = vrot.slane %v1279_v36, 1 }
 0x15e   : > { %v1281_v33 = vadd.f32 %v1280_v26, %v1279_v36 }
 0x160   : > { %v1282_v39 = vmul.f32 0.015625, %v1281_v33 }
 0x162   : > { %v2147_v40 = vsub.f32 %v2091_v29, %v1282_v39  ;;  %v2150_v42 = vsub.f32 %v2099_v56, %v1282_v39  ;;  %v2153_v37 = vsub.f32 %v2109_v6, %v1282_v39  ;;  %v2156_v43 = vsub.f32 %v2118_v20, %v1282_v39 }
 0x163   : > { %v2158_v44 = vsub.f32 %v1199_v35, %v1282_v39  ;;  %v2160_v45 = vsub.f32 %v1200_v5, %v1282_v39  ;;  %v2162_v47 = vsub.f32 %v1201_v46, %v1282_v39  ;;  %v2164_v50 = vsub.f32 %v1202_v14, %v1282_v39 }
 0x164   : > { %v2166_v51 = vsub.f32 %v1203_v23, %v1282_v39  ;;  %v1292_v29 = vmul.f32 %v2147_v40, %v2147_v40  ;;  %v1293_v56 = vmul.f32 %v2150_v42, %v2150_v42  ;;  %v1294_v6 = vmul.f32 %v2153_v37, %v2153_v37 }
 0x165   : > { %v1295_v20 = vmul.f32 %v2156_v43, %v2156_v43  ;;  %v1296_v53 = vmul.f32 %v2158_v44, %v2158_v44  ;;  %v1297_v58 = vmul.f32 %v2160_v45, %v2160_v45 }
 0x166   : > { %v1301_v35 = vmul.f32 %v1292_v29, %v2083_v41  ;;  %v1302_v5 = vmul.f32 %v1293_v56, %v2093_v52  ;;  %v1303_v55 = vmul.f32 %v1294_v6, %v2105_v3  ;;  %v1298_v41 = vmul.f32 %v2162_v47, %v2162_v47 }
 0x167   : > { %v1304_v59 = vmul.f32 %v1295_v20, %v2114_v19  ;;  %v1305_v52 = vmul.f32 %v1296_v53, %v2123_v32  ;;  %v1299_v3 = vmul.f32 %v2164_v50, %v2164_v50  ;;  %v1306_v1 = vmul.f32 %v1297_v58, %v2129_v49 }
 0x168   : > { %v1310_v57 = vsel %vm1258_vm4, %v1301_v35, 0.0  ;;  %v1311_v48 = vsel %vm1258_vm4, %v1302_v5, 0.0  ;;  %v1313_v63 = vsel %vm1258_vm4, %v1303_v55, 0.0  ;;  %v1300_v19 = vmul.f32 %v2166_v51, %v2166_v51 }
 0x169   : > { %v1312_v61 = vadd.f32 %v1311_v48, %v1310_v57  ;;  %v1315_v46 = vsel %vm1258_vm4, %v1304_v59, 0.0  ;;  %v1307_v60 = vmul.f32 %v1298_v41, %v2137_v2  ;;  %v1317_v4 = vsel %vm1258_vm4, %v1305_v52, 0.0 }
 0x16a   : > { %v1308_v32 = vmul.f32 %v1299_v3, %v1242_v15  ;;  %v1319_v10 = vsel %vm1258_vm4, %v1306_v1, 0.0  ;;  %v1309_v12 = vmul.f32 %v1300_v19, %v1247_v24 }
 0x16b   : > { %v1314_v0 = vadd.f32 %v1313_v63, %v1312_v61  ;;  %v1321_v7 = vsel %vm1258_vm4, %v1307_v60, 0.0 }
 0x16c   : > { %v1323_v49 = vsel %vm1258_vm4, %v1308_v32, 0.0  ;;  %v1325_v38 = vsel %vm1258_vm4, %v1309_v12, 0.0 }
 0x16d   : > { %v1316_v9 = vadd.f32 %v1315_v46, %v1314_v0 }
 0x16f   : > { %v1318_v8 = vadd.f32 %v1317_v4, %v1316_v9 }
 0x171   : > { %v1320_v11 = vadd.f32 %v1319_v10, %v1318_v8 }
 0x173   : > { %v1322_v13 = vadd.f32 %v1321_v7, %v1320_v11 }
 0x175   : > { %v1324_v14 = vadd.f32 %v1323_v49, %v1322_v13 }
 0x177   : > { %v1326_v16 = vadd.f32 %v1325_v38, %v1324_v14 }
 0x179   : > { %v1327_v18 = vrot.slane %v1326_v16, 4 }
 0x17b   : > { %v1328_v54 = vadd.f32 %v1327_v18, %v1326_v16 }
 0x17d   : > { %v1329_v2 = vrot.slane %v1328_v54, 2 }
 0x17f   : > { %v1330_v17 = vadd.f32 %v1329_v2, %v1328_v54 }
 0x181   : > { %v1331_v21 = vrot.slane %v1330_v17, 1 }
 0x183   : > { %v1332_v22 = vadd.f32 %v1331_v21, %v1330_v17 }
 0x185   : > { %v1333_v15 = vmul.f32 0.015625, %v1332_v22 }
 0x187   : > { %v1334_v23 = vadd.f32 1e-05, %v1333_v15 }
 0x189   : > { %1784 = vrsqrt.f32 %v1334_v23  ;;  %vm1341_vm6 = vweird.f32 %v1334_v23 }
 0x18f   : > { %v1785_v25 = vpop.eup %1784 }
 0x190   : > { %v1336_v24 = vmul.f32 %v1785_v25, %v1334_v23  ;;  %vm1342_vm5 = vweird.f32 %v1785_v25 }
 0x191   : > { %vm1343_vm7 = vmor %vm1341_vm6, %vm1342_vm5 }
 0x192   : > { %v1337_v27 = vmul.f32 %v1785_v25, %v1336_v24 }
 0x194   : > { %v1338_v30 = vmul.f32 0.5, %v1337_v27 }
 0x196   : > { %v1339_v31 = vsub.f32 1.5, %v1338_v30 }
 0x198   : > { %v1340_v28 = vmul.f32 %v1785_v25, %v1339_v31 }
 0x19a   : > { %v1344_v34 = vsel %vm1343_vm7, %v1785_v25, %v1340_v28 }
 0x19b   : > { %v1345_v62 = vmul.f32 %v1344_v34, %v2147_v40  ;;  %v1346_v36 = vmul.f32 %v1344_v34, %v2150_v42  ;;  %v1347_v26 = vmul.f32 %v1344_v34, %v2153_v37  ;;  %v1348_v33 = vmul.f32 %v1344_v34, %v2156_v43 }
 0x19c   : > { %v1349_v39 = vmul.f32 %v1344_v34, %v2158_v44  ;;  %v1350_v29 = vmul.f32 %v1344_v34, %v2160_v45  ;;  %v2209_v56 = vmul.f32 %v1344_v34, %v2162_v47  ;;  %v2212_v6 = vmul.f32 %v1344_v34, %v2164_v50 }
 0x19d   : > { %v2215_v20 = vmul.f32 %v1344_v34, %v2166_v51  ;;  %v1363_v40 = vmul.f32 1.442695, %v1345_v62  ;;  %v1365_v42 = vmul.f32 1.442695, %v1346_v36  ;;  %v1367_v35 = vmul.f32 1.442695, %v1347_v26 }
 0x19e   : > { %v1369_v37 = vmul.f32 1.442695, %v1348_v33  ;;  %v1371_v43 = vmul.f32 1.442695, %v1349_v39  ;;  %v1373_v44 = vmul.f32 1.442695, %v1350_v29 }
 0x19f   : > { %1786 = vpow2.f32 %v1363_v40  ;;  %v1375_v45 = vmul.f32 1.442695, %v2209_v56  ;;  %v1377_v47 = vmul.f32 1.442695, %v2212_v6  ;;  %v1379_v50 = vmul.f32 1.442695, %v2215_v20 }
 0x1a0   : > { %1788 = vpow2.f32 %v1365_v42  ;;  %vm1354_vm8 = vcmp.gt.f32.partialorder %v1345_v62, 0.0  ;;  %vm1355_vm9 = vcmp.gt.f32.partialorder %v1346_v36, 0.0  ;;  %vm1356_vm11 = vcmp.gt.f32.partialorder %v1347_v26, 0.0 }
 0x1a1   : > { %1790 = vpow2.f32 %v1367_v35  ;;  %vm1357_vm12 = vcmp.gt.f32.partialorder %v1348_v33, 0.0  ;;  %vm1358_vm13 = vcmp.gt.f32.partialorder %v1349_v39, 0.0  ;;  %vm1359_vm14 = vcmp.gt.f32.partialorder %v1350_v29, 0.0 }
 0x1a2   : > { %1792 = vpow2.f32 %v1369_v37  ;;  %vm1360_vm15 = vcmp.gt.f32.partialorder %v2209_v56, 0.0  ;;  %vm1361_vm0 = vcmp.gt.f32.partialorder %v2212_v6, 0.0  ;;  %vm1362_vm1 = vcmp.gt.f32.partialorder %v2215_v20, 0.0 }
 0x1a3   : > { %1794 = vpow2.f32 %v1371_v43 }
 0x1a4   : > { %1796 = vpow2.f32 %v1373_v44 }
 0x1a5   : > { %v1787_v51 = vpop.eup %1786  ;;  %1798 = vpow2.f32 %v1375_v45 }
 0x1a6   : > { %v1789_v5 = vpop.eup %1788  ;;  %1800 = vpow2.f32 %v1377_v47  ;;  %v1720_v53 = vadd.f32 -1.0, %v1787_v51 }
 0x1a7   : > { %v1791_v55 = vpop.eup %1790  ;;  %1802 = vpow2.f32 %v1379_v50  ;;  %v1721_v57 = vadd.f32 -1.0, %v1789_v5 }
 0x1a8   : > { %v1793_v58 = vpop.eup %1792  ;;  %v1722_v59 = vadd.f32 -1.0, %v1791_v55  ;;  %v1390_v48 = vsel %vm1354_vm8, %v1345_v62, %v1720_v53 }
 0x1a9   : > { %v1795_v61 = vpop.eup %1794  ;;  %v1723_v41 = vadd.f32 -1.0, %v1793_v58  ;;  %v1391_v52 = vsel %vm1355_vm9, %v1346_v36, %v1721_v57  ;;  %v1399_v63 = vpack.c.bf16 %v1390_v48, %v1390_v48 }
 0x1aa   : > { %v1797_v0 = vpop.eup %1796  ;;  %v1724_v3 = vadd.f32 -1.0, %v1795_v61  ;;  %v1392_v1 = vsel %vm1356_vm11, %v1347_v26, %v1722_v59  ;;  %v1400_v46 = vpack.c.bf16 %v1391_v52, %v1391_v52 }
 0x1ab   : > { %v1799_v9 = vpop.eup %1798  ;;  %v1725_v19 = vadd.f32 -1.0, %v1797_v0  ;;  %v1393_v60 = vsel %vm1357_vm12, %v1348_v33, %v1723_v41  ;;  %v1401_v4 = vpack.c.bf16 %v1392_v1, %v1392_v1  ;;  %1409 = vst.msk [vmem:[%s2224_s12] sm:$0xf] %vm1408_vm10, %v1399_v63 }
 0x1ac   : > { %v1801_v8 = vpop.eup %1800  ;;  %v1726_v32 = vadd.f32 -1.0, %v1799_v9  ;;  %v1394_v10 = vsel %vm1358_vm13, %v1349_v39, %v1724_v3  ;;  %v1402_v11 = vpack.c.bf16 %v1393_v60, %v1393_v60  ;;  %1410 = vst.msk [vmem:[%s2224_s12 + $0x4] sm:$0xf] %vm1408_vm10, %v1400_v46 }
 0x1ad   : > { %v1803_v12 = vpop.eup %1802  ;;  %v1727_v7 = vadd.f32 -1.0, %v1801_v8  ;;  %v1395_v13 = vsel %vm1359_vm14, %v1350_v29, %v1725_v19  ;;  %v1403_v49 = vpack.c.bf16 %v1394_v10, %v1394_v10  ;;  %1411 = vst.msk [vmem:[%s2224_s12 + $0x8] sm:$0xf] %vm1408_vm10, %v1401_v4 }
 0x1ae   : > { %v1728_v14 = vadd.f32 -1.0, %v1803_v12  ;;  %v1396_v38 = vsel %vm1360_vm15, %v2209_v56, %v1726_v32  ;;  %v1404_v16 = vpack.c.bf16 %v1395_v13, %v1395_v13  ;;  %1412 = vst.msk [vmem:[%s2224_s12 + $0xc] sm:$0xf] %vm1408_vm10, %v1402_v11 }
 0x1af   : > { %v1397_v18 = vsel %vm1361_vm0, %v2212_v6, %v1727_v7  ;;  %v1405_v54 = vpack.c.bf16 %v1396_v38, %v1396_v38  ;;  %1413 = vst.msk [vmem:[%s2224_s12 + $0x10] sm:$0xf] %vm1408_vm10, %v1403_v49 }
 0x1b0   : > { %v1398_v2 = vsel %vm1362_vm1, %v2215_v20, %v1728_v14  ;;  %v1406_v17 = vpack.c.bf16 %v1397_v18, %v1397_v18  ;;  %1414 = vst.msk [vmem:[%s2224_s12 + $0x14] sm:$0xf] %vm1408_vm10, %v1404_v16 }
 0x1b1   : > { %v1407_v21 = vpack.c.bf16 %v1398_v2, %v1398_v2  ;;  %1415 = vst.msk [vmem:[%s2224_s12 + $0x18] sm:$0xf] %vm1408_vm10, %v1405_v54 }
 0x1b2   : > { %1416 = vst.msk [vmem:[%s2224_s12 + $0x1c] sm:$0xf] %vm1408_vm10, %v1406_v17 }
 0x1b3   : > { %1417 = vst.msk [vmem:[%s2224_s12 + $0x20] sm:$0xf] %vm1408_vm10, %v1407_v21 }
 0x1b4 PF: > { %s14_s15 = sadd.s32 1, %s1813_s15  }
 0x1b5   : > { %p11_p4 = scmp.ge.s32.totalorder %s14_s15, 4  }
 0x1b7   :  { %13 = sbr.rel (!%p11_p4) target bundleno = 1 (0x1), region = 77 }

// kernel: down_transition_forward.7
= control target key start
LH: loop header
LB: loop body
LE: loop exit
PB: predicated region body
PF: predicated region fallthrough
CT: control target
= control target key end

     0   :  { %vm172_vm1 = vcmask 261120   ;;  %s514_s0 = inlined_call_operand.vmem [shape: bf16[128,32], index: 0, kind: input, shape index: {}]   ;;  %s515_s1 = inlined_call_operand.vmem [shape: bf16[128,32], index: 1, kind: input, shape index: {}]   ;;  %s516_s2 = inlined_call_operand.hbm [shape: f32[128,32], index: 2, kind: output, shape index: {}]  }
   0x1   :  { %v224_v0 = vld [vmem:[%s514_s0] sm:$0xff]   ;;  %v287_v2 = vld [vmem:[%s514_s0 + $0x8] sm:$0xff]   ;;  %v288_v8 = vld [vmem:[%s514_s0 + $0x10] sm:$0xff]  }
   0x2   :  { %v256_v1 = vld [vmem:[%s515_s1] sm:$0xff]   ;;  %v225_v3 = vunpack.c.l.bf16 %v224_v0  ;;  %v226_v5 = vunpack.c.h.bf16 %v224_v0  ;;  %v294_v7 = vld [vmem:[%s515_s1 + $0x8] sm:$0xff]   ;;  %v295_v9 = vld [vmem:[%s515_s1 + $0x10] sm:$0xff]   ;;  %v229_v10 = vunpack.c.l.bf16 %v287_v2  ;;  %v230_v12 = vunpack.c.h.bf16 %v287_v2 }
   0x3   :  { %v257_v4 = vunpack.c.l.bf16 %v256_v1  ;;  %v258_v6 = vunpack.c.h.bf16 %v256_v1  ;;  %v261_v11 = vunpack.c.l.bf16 %v294_v7  ;;  %v262_v13 = vunpack.c.h.bf16 %v294_v7  ;;  %v289_v22 = vld [vmem:[%s514_s0 + $0x18] sm:$0xff]  }
   0x4   :  { %v233_v16 = vunpack.c.l.bf16 %v288_v8  ;;  %v265_v17 = vunpack.c.l.bf16 %v295_v9  ;;  %v234_v20 = vunpack.c.h.bf16 %v288_v8  ;;  %v266_v21 = vunpack.c.h.bf16 %v295_v9  ;;  %v296_v25 = vld [vmem:[%s515_s1 + $0x18] sm:$0xff]  }
   0x5   :  { %v76_v14 = vadd.f32 %v257_v4, %v225_v3  ;;  %v398_v15 = vadd.f32 %v258_v6, %v226_v5  ;;  %v400_v18 = vadd.f32 %v261_v11, %v229_v10  ;;  %v402_v19 = vadd.f32 %v262_v13, %v230_v12 }
   0x6   :  { %v413_v28 = vadd.f32 %v265_v17, %v233_v16  ;;  %v415_v29 = vadd.f32 %v266_v21, %v234_v20  ;;  %v237_v30 = vunpack.c.l.bf16 %v289_v22 }
   0x7   :  { %v108_v23 = vmul.f32 1.442695, %v76_v14  ;;  %v110_v24 = vmul.f32 1.442695, %v398_v15  ;;  %vm92_vm0 = vcmp.gt.f32.partialorder %v76_v14, 0.0 }
   0x8   :  { %v112_v26 = vmul.f32 1.442695, %v400_v18  ;;  %v114_v27 = vmul.f32 1.442695, %v402_v19 }
   0x9   :  { %304 = vpow2.f32 %v108_v23 }
   0xa   :  { %7 = vsyncpa [#allocation3], 0  ;;  %306 = vpow2.f32 %v110_v24  ;;  %v269_v31 = vunpack.c.l.bf16 %v296_v25  ;;  %v238_v32 = vunpack.c.h.bf16 %v289_v22  ;;  %v270_v33 = vunpack.c.h.bf16 %v296_v25  ;;  %v290_v34 = vld [vmem:[%s514_s0 + $0x20] sm:$0xff]   ;;  %v291_v40 = vld [vmem:[%s514_s0 + $0x28] sm:$0xff]   ;;  %s195_s15 = sshll.u32 %s516_s2, 4  ;;  %s363_s16 = smov 128   ;;  %s196_s15 = int_to_ptr.hbm [resolvable:$true] %s195_s15 }
   0xb   :  { %v297_v35 = vld [vmem:[%s515_s1 + $0x20] sm:$0xff]   ;;  %vm93_vm2 = vcmp.gt.f32.partialorder %v398_v15, 0.0  ;;  %vm94_vm3 = vcmp.gt.f32.partialorder %v400_v18, 0.0  ;;  %308 = vpow2.f32 %v112_v26  ;;  %v116_v36 = vmul.f32 1.442695, %v413_v28  ;;  %v298_v43 = vld [vmem:[%s515_s1 + $0x28] sm:$0xff]  }
   0xc   :  { %310 = vpow2.f32 %v114_v27  ;;  %v118_v37 = vmul.f32 1.442695, %v415_v29  ;;  %v427_v38 = vadd.f32 %v269_v31, %v237_v30  ;;  %v429_v39 = vadd.f32 %v270_v33, %v238_v32  ;;  %v292_v3 = vld [vmem:[%s514_s0 + $0x30] sm:$0xff]   ;;  %v293_v16 = vld [vmem:[%s514_s0 + $0x38] sm:$0xff]   ;;  %s362_s0 = smov [#allocation2]   ;;  %s364_s17 = smov 8  }
   0xd   :  { %vm95_vm4 = vcmp.gt.f32.partialorder %v402_v19, 0.0  ;;  %312 = vpow2.f32 %v116_v36  ;;  %v241_v41 = vunpack.c.l.bf16 %v290_v34  ;;  %v273_v42 = vunpack.c.l.bf16 %v297_v35  ;;  %v299_v8 = vld [vmem:[%s515_s1 + $0x30] sm:$0xff]   ;;  %v300_v21 = vld [vmem:[%s515_s1 + $0x38] sm:$0xff]   ;;  %s193_s1 = sshll.u32 %s362_s0, 4  ;;  %s194_s1 = int_to_ptr.vmem [resolvable:$true] %s193_s1 }
   0xe   :  { %vm96_vm5 = vcmp.gt.f32.partialorder %v413_v28, 0.0  ;;  %314 = vpow2.f32 %v118_v37  ;;  %v120_v44 = vmul.f32 1.442695, %v427_v38  ;;  %v242_v45 = vunpack.c.h.bf16 %v290_v34 }
   0xf   :  { %v305_v46 = vpop.eup %304  ;;  %v122_v47 = vmul.f32 1.442695, %v429_v39  ;;  %v441_v48 = vadd.f32 %v273_v42, %v241_v41  ;;  %v274_v49 = vunpack.c.h.bf16 %v297_v35  ;;  %v245_v50 = vunpack.c.l.bf16 %v291_v40 }
  0x10   :  { %v307_v51 = vpop.eup %306  ;;  %v207_v52 = vadd.f32 -1.0, %v305_v46  ;;  %vm97_vm6 = vcmp.gt.f32.partialorder %v415_v29, 0.0  ;;  %316 = vpow2.f32 %v120_v44  ;;  %v277_v53 = vunpack.c.l.bf16 %v298_v43 }
  0x11   :  { %v309_v54 = vpop.eup %308  ;;  %v208_v55 = vadd.f32 -1.0, %v307_v51  ;;  %318 = vpow2.f32 %v122_v47  ;;  %v124_v56 = vmul.f32 1.442695, %v441_v48  ;;  %v246_v57 = vunpack.c.h.bf16 %v291_v40 }
  0x12   :  { %v311_v58 = vpop.eup %310  ;;  %v156_v59 = vsel %vm92_vm0, %v76_v14, %v207_v52  ;;  %v209_v60 = vadd.f32 -1.0, %v309_v54  ;;  %v446_v61 = vadd.f32 %v274_v49, %v242_v45  ;;  %v448_v62 = vadd.f32 %v277_v53, %v245_v50 }
  0x13   :  { %v313_v63 = vpop.eup %312  ;;  %173 = vst.msk [vmem:[#allocation2] sm:$0xff] %vm172_vm1, %v156_v59  ;;  %v157_v0 = vsel %vm93_vm2, %v398_v15, %v208_v55  ;;  %v210_v1 = vadd.f32 -1.0, %v311_v58  ;;  %320 = vpow2.f32 %v124_v56  ;;  %v278_v2 = vunpack.c.h.bf16 %v298_v43 }
  0x14   :  { %v315_v4 = vpop.eup %314  ;;  %174 = vst.msk [vmem:[#allocation2 + $0x8] sm:$0xff] %vm172_vm1, %v157_v0  ;;  %v158_v5 = vsel %vm94_vm3, %v400_v18, %v209_v60  ;;  %v211_v6 = vadd.f32 -1.0, %v313_v63  ;;  %vm98_vm7 = vcmp.gt.f32.partialorder %v427_v38, 0.0  ;;  %v126_v7 = vmul.f32 1.442695, %v446_v61 }
  0x15   :  { %175 = vst.msk [vmem:[#allocation2 + $0x10] sm:$0xff] %vm172_vm1, %v158_v5  ;;  %v159_v9 = vsel %vm95_vm4, %v402_v19, %v210_v1  ;;  %v212_v10 = vadd.f32 -1.0, %v315_v4  ;;  %vm99_vm8 = vcmp.gt.f32.partialorder %v429_v39, 0.0  ;;  %v128_v11 = vmul.f32 1.442695, %v448_v62 }
  0x16   :  { %v317_v12 = vpop.eup %316  ;;  %176 = vst.msk [vmem:[#allocation2 + $0x18] sm:$0xff] %vm172_vm1, %v159_v9  ;;  %v160_v13 = vsel %vm96_vm5, %v413_v28, %v211_v6  ;;  %322 = vpow2.f32 %v126_v7  ;;  %v87_v14 = vadd.f32 %v278_v2, %v246_v57  ;;  %v249_v15 = vunpack.c.l.bf16 %v292_v3 }
  0x17   :  { %v319_v17 = vpop.eup %318  ;;  %177 = vst.msk [vmem:[#allocation2 + $0x20] sm:$0xff] %vm172_vm1, %v160_v13  ;;  %v161_v18 = vsel %vm97_vm6, %v415_v29, %v212_v10  ;;  %v213_v19 = vadd.f32 -1.0, %v317_v12  ;;  %324 = vpow2.f32 %v128_v11  ;;  %v281_v20 = vunpack.c.l.bf16 %v299_v8 }
  0x18   :  { %178 = vst.msk [vmem:[#allocation2 + $0x28] sm:$0xff] %vm172_vm1, %v161_v18  ;;  %v214_v22 = vadd.f32 -1.0, %v319_v17  ;;  %vm100_vm9 = vcmp.gt.f32.partialorder %v441_v48, 0.0  ;;  %v130_v23 = vmul.f32 1.442695, %v87_v14  ;;  %v250_v24 = vunpack.c.h.bf16 %v292_v3 }
  0x19   :  { %v321_v25 = vpop.eup %320  ;;  %v162_v26 = vsel %vm98_vm7, %v427_v38, %v213_v19  ;;  %v88_v27 = vadd.f32 %v281_v20, %v249_v15  ;;  %v282_v28 = vunpack.c.h.bf16 %v299_v8  ;;  %v253_v29 = vunpack.c.l.bf16 %v293_v16 }
  0x1a   :  { %179 = vst.msk [vmem:[#allocation2 + $0x30] sm:$0xff] %vm172_vm1, %v162_v26  ;;  %v163_v30 = vsel %vm99_vm8, %v429_v39, %v214_v22  ;;  %v215_v31 = vadd.f32 -1.0, %v321_v25  ;;  %326 = vpow2.f32 %v130_v23  ;;  %v285_v32 = vunpack.c.l.bf16 %v300_v21 }
  0x1b   :  { %180 = vst.msk [vmem:[#allocation2 + $0x38] sm:$0xff] %vm172_vm1, %v163_v30  ;;  %v132_v33 = vmul.f32 1.442695, %v88_v27  ;;  %v89_v34 = vadd.f32 %v282_v28, %v250_v24  ;;  %v254_v35 = vunpack.c.h.bf16 %v293_v16  ;;  %vm101_vm10 = vcmp.gt.f32.partialorder %v446_v61, 0.0 }
  0x1c   :  { %v323_v36 = vpop.eup %322  ;;  %v164_v37 = vsel %vm100_vm9, %v441_v48, %v215_v31  ;;  %v90_v38 = vadd.f32 %v285_v32, %v253_v29  ;;  %v286_v40 = vunpack.c.h.bf16 %v300_v21  ;;  %vm102_vm11 = vcmp.gt.f32.partialorder %v448_v62, 0.0 }
  0x1d   :  { %v325_v41 = vpop.eup %324  ;;  %181 = vst.msk [vmem:[#allocation2 + $0x40] sm:$0xff] %vm172_vm1, %v164_v37  ;;  %v216_v39 = vadd.f32 -1.0, %v323_v36  ;;  %328 = vpow2.f32 %v132_v33  ;;  %v134_v42 = vmul.f32 1.442695, %v89_v34  ;;  %vm103_vm12 = vcmp.gt.f32.partialorder %v87_v14, 0.0 }
  0x1e   :  { %v217_v43 = vadd.f32 -1.0, %v325_v41  ;;  %v136_v44 = vmul.f32 1.442695, %v90_v38  ;;  %v91_v45 = vadd.f32 %v286_v40, %v254_v35  ;;  %vm104_vm13 = vcmp.gt.f32.partialorder %v88_v27, 0.0 }
  0x1f   :  { %v165_v46 = vsel %vm101_vm10, %v446_v61, %v216_v39  ;;  %330 = vpow2.f32 %v134_v42  ;;  %vm105_vm14 = vcmp.gt.f32.partialorder %v89_v34, 0.0  ;;  %vm106_vm15 = vcmp.gt.f32.partialorder %v90_v38, 0.0 }
  0x20   :  { %v327_v47 = vpop.eup %326  ;;  %182 = vst.msk [vmem:[#allocation2 + $0x48] sm:$0xff] %vm172_vm1, %v165_v46  ;;  %v166_v48 = vsel %vm102_vm11, %v448_v62, %v217_v43  ;;  %332 = vpow2.f32 %v136_v44  ;;  %v138_v49 = vmul.f32 1.442695, %v91_v45  ;;  %vm107_vm0 = vcmp.gt.f32.partialorder %v91_v45, 0.0 }
  0x21   :  { %183 = vst.msk [vmem:[#allocation2 + $0x50] sm:$0xff] %vm172_vm1, %v166_v48  ;;  %v218_v50 = vadd.f32 -1.0, %v327_v47 }
  0x22   :  { %334 = vpow2.f32 %v138_v49 }
  0x23   :  { %v329_v51 = vpop.eup %328  ;;  %v167_v52 = vsel %vm103_vm12, %v87_v14, %v218_v50 }
  0x24   :  { %184 = vst.msk [vmem:[#allocation2 + $0x58] sm:$0xff] %vm172_vm1, %v167_v52  ;;  %v219_v53 = vadd.f32 -1.0, %v329_v51 }
  0x25   :  { %v331_v54 = vpop.eup %330 }
  0x26   :  { %v333_v55 = vpop.eup %332  ;;  %v168_v56 = vsel %vm104_vm13, %v88_v27, %v219_v53  ;;  %v220_v57 = vadd.f32 -1.0, %v331_v54 }
  0x27   :  { %185 = vst.msk [vmem:[#allocation2 + $0x60] sm:$0xff] %vm172_vm1, %v168_v56  ;;  %v221_v58 = vadd.f32 -1.0, %v333_v55 }
  0x28   :  { %v335_v59 = vpop.eup %334  ;;  %v169_v60 = vsel %vm105_vm14, %v89_v34, %v220_v57 }
  0x29   :  { %186 = vst.msk [vmem:[#allocation2 + $0x68] sm:$0xff] %vm172_vm1, %v169_v60  ;;  %v170_v61 = vsel %vm106_vm15, %v90_v38, %v221_v58  ;;  %v222_v62 = vadd.f32 -1.0, %v335_v59 }
  0x2a   :  { %187 = vst.msk [vmem:[#allocation2 + $0x70] sm:$0xff] %vm172_vm1, %v170_v61 }
  0x2b   :  { %v171_v63 = vsel %vm107_vm0, %v91_v45, %v222_v62 }
  0x2c   :  { %188 = vst.msk [vmem:[#allocation2 + $0x78] sm:$0xff] %vm172_vm1, %v171_v63 }
  0x2d   :  { %201 = dma.vmem_to_hbm [thread:$0]  %s194_s1, 2048, %s196_s15, [#allocation3], %s363_s16, %s363_s16, %s364_s17  }
  0x2e   :  { %360 = dma.done.wait [#allocation3], 2048  }
  0x2f   :  { %361 = vsyncadd [#allocation3], 4294965248 }
  0x30   :  { %206 = vsyncpa [#allocation3], 1 }

// kernel: down_transition_forward.5
= control target key start
LH: loop header
LB: loop body
LE: loop exit
PB: predicated region body
PF: predicated region fallthrough
CT: control target
= control target key end

     0   :  { %s1849_s15 = smov 0   ;;  %s2409_s0 = inlined_call_operand.vmem [shape: bf16[2,110,32], index: 0, kind: input, shape index: {}]   ;;  %s2410_s1 = inlined_call_operand.vmem [shape: bf16[9,32,32], index: 1, kind: input, shape index: {}]   ;;  %s2411_s2 = inlined_call_operand.vmem [shape: f32[1,32], index: 2, kind: input, shape index: {}]   ;;  %s2412_s3 = inlined_call_operand.vmem [shape: f32[80,1], index: 3, kind: input, shape index: {}]   ;;  %s2413_s4 = inlined_call_operand.vmem [shape: bf16[2,80,32], index: 4, kind: output, shape index: {}]  }
   0x1 LB: > { %s1519_s16 = sadd.s32 4294967295, %s1821_s15   ;;  %p1523_p0 = scmp.ge.s32.totalorder %s1821_s15, 1  ;;  %s1821_s15 = sphi %s1849_s15, %s14_s15  }
   0x2   : > { %p162_p1 = scmp.lt.s32.totalorder %s1821_s15, 3 }
   0x4   : > { %p163_p2 = pnand %p1523_p0, %p162_p1 }
   0x5   : > { %p188_p3 = scmp.lt.s32.totalorder (!%p163_p2), %s1519_s16, 1 }
   0x6   : > { %166 = sbr.rel (%p163_p2) target bundleno = 451 (0x1c3), region = 36 }
   0xb   : > { %v1742_v0 = vld [vmem:[%s2410_s1 + $0x18] sm:$0xff]  ;;  %v1741_v1 = vld [vmem:[%s2410_s1 + $0x10] sm:$0xff]  ;;  %s2415_s16 = smov (!%p188_p3, %s1519_s16), 1  ;;  %v1744_v2 = vld [vmem:[%s2410_s1 + $0x28] sm:$0xff]  ;;  %vm247_vm0 = vsmask.f32 7424 }
   0xc   : > { %1772 = vmatpush.bf16.msra.mxu1 %v1742_v0  ;;  %1773 = vmatpush.bf16.msra.mxu2 %v1742_v0  ;;  %s1778_s23 = smul.u32 56, %s2415_s16  ;;  %v1740_v3 = vld [vmem:[%s2410_s1 + $0x8] sm:$0xff]  ;;  %v1750_v4 = vld [vmem:[%s2410_s1 + $0x38] sm:$0xff]  ;;  %v1739_v6 = vld [vmem:[%s2410_s1] sm:$0xff]  ;;  %vm304_vm1 = vcmask 261120   ;;  %vm419_vm2 = vcmask 1046528  }
   0xd   : > { %1774 = vmatpush.bf16.msra.mxu3 %v1742_v0  ;;  %326 = vmatpush.bf16.msra.mxu0 %v1742_v0  ;;  %v1752_v5 = vld [vmem:[%s2410_s1 + $0x48] sm:$0xff]  ;;  %v1743_v7 = vld [vmem:[%s2410_s1 + $0x20] sm:$0xff]  ;;  %v1749_v13 = vld [vmem:[%s2410_s1 + $0x30] sm:$0xff]  ;;  %vm637_vm3 = vsmask.f32 6400  ;;  %vm771_vm4 = vcmask 1045504  }
   0xe   : > { %s1881_s6 = scalar_lea.vmem %s2409_s0, %s1778_s23  ;;  %v1751_v19 = vld [vmem:[%s2410_s1 + $0x40] sm:$0xff]  ;;  %v1760_v44 = vld [vmem:[%s2410_s1 + $0x68] sm:$0xff]  ;;  %v1762_v45 = vld [vmem:[%s2410_s1 + $0x78] sm:$0xff]  ;;  %vm989_vm5 = vsmask.f32 5376  ;;  %vm1123_vm6 = vcmask 1044480  }
   0xf   : > { %v1890_v8 = vld [vmem:[%s1881_s6 + $0x8] sm:$0xff]  ;;  %v1893_v9 = vld [vmem:[%s1881_s6 + $0x10] sm:$0xff]  ;;  %v1896_v10 = vld [vmem:[%s1881_s6 + $0x18] sm:$0xff]  ;;  %s1779_s5 = smul.u32 40, %s2415_s16  ;;  %vm1453_vm11 = vcmask 257024  }
  0x10   : > { %1775 = vmatpush.bf16.msra.mxu1 %v1741_v1  ;;  %1776 = vmatpush.bf16.msra.mxu2 %v1741_v1  ;;  %v1899_v11 = vld [vmem:[%s1881_s6 + $0x20] sm:$0xff]  ;;  %v213_v12 = vld [vmem:[%s1881_s6 + $0x28] sm:$0x1]  ;;  %v256_v14 = vshll.u32 %v1890_v8, 16  ;;  %v260_v15 = vshrl.u32 %v1890_v8, 16  ;;  %v264_v16 = vshll.u32 %v1893_v9, 16 }
  0x11   : > { %1777 = vmatpush.bf16.msra.mxu3 %v1741_v1  ;;  %327 = vmatpush.bf16.msra.mxu0 %v1741_v1  ;;  %v268_v17 = vshrl.u32 %v1893_v9, 16  ;;  %v1910_v18 = vld [vmem:[%s1881_s6] sm:$0xff]   ;;  %v272_v20 = vshll.u32 %v1896_v10, 16  ;;  %v240_v21 = vunpack.c.l.b16 %v213_v12  ;;  %v280_v22 = vshll.u32 %v1899_v11, 16  ;;  %v1921_v28 = vld [vmem:[%s1881_s6 + $0x8] sm:$0xff]   ;;  %v1754_v46 = vld [vmem:[%s2410_s1 + $0x58] sm:$0xff]  ;;  %s2374_s9 = scalar_lea.vmem %s2413_s4, %s1779_s5 }
  0x12   : > { %v284_v23 = vshrl.u32 %v1899_v11, 16  ;;  %v502_v24 = vld [vmem:[%s1881_s6 + $0x4] sm:$0xe]  ;;  %v258_v25 = vrot.slane %v256_v14, 1  ;;  %v266_v26 = vrot.slane %v264_v16, 1  ;;  %v249_v27 = vshrl.u32 %v1910_v18, 16 }
  0x13   : > { %v274_v29 = vrot.slane %v272_v20, 1  ;;  %v1923_v30 = vpack.c.b16 %v240_v21, %v240_v21  ;;  %v282_v31 = vrot.slane %v280_v22, 1  ;;  %v251_v32 = vshll.u32 %v1910_v18, 16  ;;  %v1944_v49 = vld [vmem:[%s1881_s6 + $0xc] sm:$0xff] }
  0x14   : > { %464 = vmatpush.bf16.msrb.mxu2 %v1744_v2  ;;  %382 = vmatpush.bf16.msrb.mxu1 %v1740_v3  ;;  %v262_v33 = vor.u32 %v260_v15, %v258_v25  ;;  %v270_v34 = vor.u32 %v268_v17, %v266_v26  ;;  %v529_v35 = vunpack.c.l.b16 %v502_v24  ;;  %v530_v39 = vunpack.c.l.b16 %v1921_v28  ;;  %v1764_v51 = vld [vmem:[%s2410_s1 + $0x88] sm:$0xff]  ;;  %v1759_v24 = vld [vmem:[%s2410_s1 + $0x60] sm:$0xff] }
  0x15   : > { %590 = vmatpush.bf16.msrb.mxu3 %v1750_v4  ;;  %724 = vmatpush.bf16.msrb.mxu0 %v1752_v5  ;;  %v286_v36 = vor.u32 %v284_v23, %v282_v31  ;;  %v288_v37 = vshll.u32 %v1923_v30, 16  ;;  %v253_v38 = vrot.slane %v251_v32, 1  ;;  %v647_v54 = vshrl.u32 %v1944_v49, 16  ;;  %v1769_v5 = vld [vmem:[%s1881_s6] sm:$0xf0] }
  0x16   : > { %v267_v40 = vsel %vm247_vm0, %v262_v33, %v266_v26  ;;  %v275_v41 = vsel %vm247_vm0, %v270_v34, %v274_v29  ;;  %v540_v50 = vpack.c.b16 %v530_v39, %v529_v35  ;;  %v650_v55 = vshll.u32 %v1944_v49, 16  ;;  %v1753_v26 = vld [vmem:[%s2410_s1 + $0x50] sm:$0xff] }
  0x17   : > { %1555 = vmatmul.msk.bf16.vlgmr.msra.gmra.mxu1 %vm304_vm1, %v267_v40  ;;  %1556 = vmatmul.msk.bf16.vlgmr.msra.gmra.mxu2 %vm304_vm1, %v275_v41  ;;  %v290_v42 = vrot.slane %v288_v37, 1  ;;  %v254_v43 = vor.u32 %v253_v38, %v249_v27  ;;  %v276_v56 = vshrl.u32 %v1896_v10, 16  ;;  %v649_v59 = vrot.slane %v647_v54, 1  ;;  %v1763_v40 = vld [vmem:[%s2410_s1 + $0x80] sm:$0xff] }
  0x18   : > { %465 = vmatpush.bf16.msrb.mxu2 %v1743_v7  ;;  %383 = vmatpush.bf16.msrb.mxu1 %v1739_v6  ;;  %v639_v52 = vshrl.u32 %v540_v50, 16  ;;  %v642_v53 = vshll.u32 %v540_v50, 16  ;;  %v652_v60 = vrot.slane %v650_v55, 2  ;;  %v546_v62 = vrot.slane %v540_v50, 1  ;;  %v1770_v6 = vld [vmem:[%s1881_s6] sm:$0xe] }
  0x19   : > { %591 = vmatpush.bf16.msrb.mxu3 %v1749_v13  ;;  %725 = vmatpush.bf16.msrb.mxu0 %v1751_v19  ;;  %v291_v47 = vsel %vm247_vm0, %v286_v36, %v290_v42  ;;  %v259_v48 = vsel %vm247_vm0, %v254_v43, %v258_v25  ;;  %v278_v61 = vor.u32 %v276_v56, %v274_v29  ;;  %v547_v63 = vrot.slane %v1944_v49, 1  ;;  %v1966_v7 = vld [vmem:[%s1881_s6 + $0x14] sm:$0xff]  ;;  %v1984_v25 = vld [vmem:[%s1881_s6 + $0x1c] sm:$0xff]  ;;  %v2008_v41 = vld [vmem:[%s1881_s6 + $0x24] sm:$0xff] }
  0x1a   : > { %1558 = vmatmul.msk.bf16.vlgmr.msra.gmra.mxu3 %vm304_vm1, %v291_v47  ;;  %1554 = vmatmul.msk.bf16.vlgmr.msra.gmra.mxu0 %vm304_vm1, %v259_v48  ;;  %v641_v57 = vrot.slane %v639_v52, 1  ;;  %v644_v58 = vrot.slane %v642_v53, 2  ;;  %v653_v1 = vor.u32 %v652_v60, %v649_v59  ;;  %v656_v12 = vshrl.u32 %v1966_v7, 16  ;;  %v762_v48 = vld [vmem:[%s1881_s6 + $0x4] sm:$0xc] }
  0x1b   : > { %v283_v2 = vsel %vm247_vm0, %v278_v61, %v282_v31  ;;  %v548_v3 = vsel %vm419_vm2, %v546_v62, %v547_v63  ;;  %v659_v13 = vshll.u32 %v1966_v7, 16  ;;  %v1771_v14 = vor.u32 %v1770_v6, %v1769_v5  ;;  %v628_v52 = vld [vmem:[%s1881_s6 + $0x2c] sm:$0x3]  ;;  %v854_v5 = vld [vmem:[%s1881_s6 + $0x8] sm:$0xc] }
  0x1c   : > { %942 = vmatpush.bf16.msra.mxu2 %v1760_v44  ;;  %816 = vmatpush.bf16.msra.mxu1 %v1754_v46  ;;  %v645_v0 = vor.u32 %v644_v58, %v641_v57  ;;  %v658_v15 = vrot.slane %v656_v12, 1  ;;  %v549_v19 = vrot.slane %v1966_v7, 1  ;;  %v665_v27 = vshrl.u32 %v1984_v25, 16  ;;  %v512_v62 = vld [vmem:[%s1881_s6 + $0x2c] sm:$0x1] }
  0x1d   : > { %1076 = vmatpush.bf16.msra.mxu3 %v1762_v45  ;;  %1168 = vmatpush.bf16.msra.mxu0 %v1764_v51  ;;  %v661_v16 = vrot.slane %v659_v13, 2  ;;  %v420_v17 = vrot.slane %v1771_v14, 1  ;;  %v668_v29 = vshll.u32 %v1984_v25, 16  ;;  %v423_v33 = vrot.slane %v1893_v9, 1 }
  0x1e   : > { %v654_v4 = vsel %vm637_vm3, %v645_v0, %v653_v1  ;;  %v550_v22 = vsel %vm419_vm2, %v547_v63, %v549_v19  ;;  %v667_v31 = vrot.slane %v665_v27, 1  ;;  %v551_v34 = vrot.slane %v1984_v25, 1 }
  0x1f   : > { %v662_v20 = vor.u32 %v661_v16, %v658_v15  ;;  %v670_v32 = vrot.slane %v668_v29, 2  ;;  %v429_v42 = vrot.slane %v1923_v30, 1  ;;  %v674_v43 = vshrl.u32 %v2008_v41, 16  ;;  %v2048_v16 = vld [vmem:[%s1881_s6 + $0x10] sm:$0xff] }
  0x20   : > { %943 = vmatpush.bf16.msra.mxu2 %v1759_v24  ;;  %817 = vmatpush.bf16.msra.mxu1 %v1753_v26  ;;  %v552_v37 = vsel %vm419_vm2, %v549_v19, %v551_v34  ;;  %v677_v44 = vshll.u32 %v2008_v41, 16  ;;  %v425_v50 = vrot.slane %v1896_v10, 1  ;;  %v769_v51 = vunpack.c.l.b16 %v762_v48 }
  0x21   : > { %v663_v23 = vsel %vm637_vm3, %v653_v1, %v662_v20  ;;  %v671_v35 = vor.u32 %v670_v32, %v667_v31  ;;  %1169 = vmatpush.bf16.msra.mxu0 %v1763_v40  ;;  %v676_v46 = vrot.slane %v674_v43, 1  ;;  %v553_v30 = vrot.slane %v2008_v41, 1 }
  0x22   : > { %v679_v47 = vrot.slane %v677_v44, 2  ;;  %v770_v53 = vpack.c.b16 %v530_v39, %v769_v51  ;;  %v635_v55 = vunpack.c.l.b16 %v628_v52  ;;  %v426_v56 = vsel %vm419_vm2, %v423_v33, %v425_v50 }
  0x23   : > { %v672_v38 = vsel %vm637_vm3, %v662_v20, %v671_v35  ;;  %v773_v58 = vrot.slane %v1944_v49, 2  ;;  %v554_v39 = vsel %vm419_vm2, %v551_v34, %v553_v30  ;;  %v775_v49 = vrot.slane %v1966_v7, 2  ;;  %v1114_v20 = vld [vmem:[%s1881_s6 + $0x8] sm:$0x8]  ;;  %v1210_v7 = vld [vmem:[%s2412_s3 + $0x18] sm:$0xff] }
  0x24   : > { %v680_v54 = vor.u32 %v679_v47, %v676_v46  ;;  %v772_v57 = vrot.slane %v770_v53, 2  ;;  %v2033_v61 = vpack.c.b16 %v635_v55, %v635_v55  ;;  %v539_v63 = vunpack.c.l.b16 %v512_v62  ;;  %v2084_v53 = vld [vmem:[%s1881_s6 + $0x20] sm:$0xff] }
  0x25   : > { %v776_v1 = vsel %vm771_vm4, %v773_v58, %v775_v49  ;;  %v881_v13 = vunpack.c.l.b16 %v854_v5  ;;  %v882_v14 = vunpack.c.h.b16 %v1921_v28  ;;  %v999_v28 = vshrl.u32 %v2048_v16, 16 }
  0x26   : > { %v774_v59 = vsel %vm771_vm4, %v772_v57, %v773_v58  ;;  %v681_v60 = vsel %vm637_vm3, %v671_v35, %v680_v54  ;;  %v686_v0 = vshll.u32 %v2033_v61, 16  ;;  %v1121_v24 = vunpack.c.l.b16 %v1114_v20 }
  0x27   : > { %1557 = vmatmul.msk.bf16.gmra.mxu2 %vm304_vm1, %v283_v2  ;;  %1567 = vmatmul.msk.bf16.vlgmr.msrb.gmra.mxu1 %vm304_vm1, %v1910_v18  ;;  %v421_v18 = vrot.slane %v1890_v8, 1  ;;  %v545_v2 = vpack.c.b16 %v539_v63, %v539_v63  ;;  %v892_v19 = vpack.c.b16 %v882_v14, %v881_v13  ;;  %v1125_v34 = vrot.slane %v2048_v16, 3 }
  0x28   : > { %v1122_v29 = vpack.c.b16 %v882_v14, %v1121_v24  ;;  %v899_v46 = vrot.slane %v2048_v16, 2  ;;  %v1020_v55 = vshll.u32 %v2084_v53, 16  ;;  %v1129_v62 = vrot.slane %v2084_v53, 3 }
  0x29   : > { %v422_v21 = vsel %vm419_vm2, %v420_v17, %v421_v18  ;;  %v424_v36 = vsel %vm419_vm2, %v421_v18, %v423_v33  ;;  %v555_v6 = vrot.slane %v545_v2, 1 }
  0x2a   : > { %1617 = vmatmul.msk.bf16.vlgmr.msrb.gmra.mxu3 %vm304_vm1, %v548_v3  ;;  %1634 = vmatmul.msk.bf16.vlgmr.msrb.gmra.mxu0 %vm304_vm1, %v654_v4  ;;  %v688_v4 = vrot.slane %v686_v0, 2  ;;  %v1124_v33 = vrot.slane %v1122_v29, 3  ;;  %v1022_v58 = vrot.slane %v1020_v55, 3 }
  0x2b   : > { %v556_v17 = vsel %vm419_vm2, %v553_v30, %v555_v6  ;;  %v1208_v30 = vld [vmem:[%s2412_s3 + $0x8] sm:$0xff] }
  0x37   : > { %1568 = vmatmul.msk.bf16.gmra.mxu1 %vm304_vm1, %v1890_v8  ;;  %1584 = vmatmul.msk.bf16.vlgmr.msrb.gmra.mxu2 %vm304_vm1, %v422_v21  ;;  %v1761_v8 = vld [vmem:[%s2410_s1 + $0x70] sm:$0xff]  ;;  %v991_v21 = vshrl.u32 %v892_v19, 16 }
  0x38   : > { %1077 = vmatpush.bf16.msra.mxu3 %v1761_v8 }
  0x39   : > { %v993_v8 = vrot.slane %v991_v21, 2 }
  0x3a   : > { %1618 = vmatmul.msk.bf16.gmra.mxu3 %vm304_vm1, %v550_v22  ;;  %1635 = vmatmul.msk.bf16.gmra.mxu0 %vm304_vm1, %v663_v23  ;;  %v994_v22 = vshll.u32 %v892_v19, 16  ;;  %v1002_v23 = vshll.u32 %v2048_v16, 16  ;;  %v779_v16 = vrot.slane %v2008_v41, 2 }
  0x3c   : > { %v996_v26 = vrot.slane %v994_v22, 3  ;;  %v1004_v27 = vrot.slane %v1002_v23, 3 }
  0x3e   : > { %v997_v31 = vor.u32 %v996_v26, %v993_v8 }
  0x47   : > { %1569 = vmatmul.msk.bf16.gmra.mxu1 %vm304_vm1, %v1893_v9  ;;  %1585 = vmatmul.msk.bf16.gmra.mxu2 %vm304_vm1, %v424_v36  ;;  %v427_v9 = vrot.slane %v1899_v11, 1  ;;  %v1126_v36 = vsel %vm1123_vm6, %v1124_v33, %v1125_v34 }
  0x49   : > { %v2017_v45 = vsel %vm419_vm2, %v427_v9, %v429_v42  ;;  %v428_v15 = vsel %vm419_vm2, %v425_v50, %v427_v9  ;;  %v1207_v9 = vld [vmem:[%s2412_s3] sm:$0xff]  ;;  %v1823_v42 = vmov 0  }
  0x4a   : > { %1619 = vmatmul.msk.bf16.gmra.mxu3 %vm304_vm1, %v552_v37  ;;  %1636 = vmatmul.msk.bf16.gmra.mxu0 %vm304_vm1, %v672_v38  ;;  %v2067_v37 = vld [vmem:[%s1881_s6 + $0x18] sm:$0xff] }
  0x4b   : > { %v1008_v38 = vshrl.u32 %v2067_v37, 16  ;;  %v1011_v40 = vshll.u32 %v2067_v37, 16  ;;  %1789 = vset.pattern.permute.xlu0 %v1823_v42  ;;  %1790 = vset.pattern.permute.xlu1 %v1823_v42  ;;  %v1127_v48 = vrot.slane %v2067_v37, 3 }
  0x4c   : > { %1232 = vperm.xlu0 %1789, %v1207_v9   ;;  %1791 = vset.pattern.permute.xlu2 %v1823_v42 }
  0x4d   : > { %v1010_v43 = vrot.slane %v1008_v38, 2  ;;  %v1013_v44 = vrot.slane %v1011_v40, 3  ;;  %v1128_v52 = vsel %vm1123_vm6, %v1125_v34, %v1127_v48  ;;  %v1130_v2 = vsel %vm1123_vm6, %v1127_v48, %v1129_v62  ;;  %v1216_v38 = vld [vmem:[%s2412_s3 + $0x48] sm:$0xff]  ;;  %v1214_v48 = vld [vmem:[%s2412_s3 + $0x38] sm:$0xff] }
  0x4f   : > { %v1014_v47 = vor.u32 %v1013_v44, %v1010_v43  ;;  %v781_v43 = vrot.slane %v2033_v61, 2 }
  0x54   : > { %1237 = vperm.xlu0 %1789, %v1208_v30   ;;  %v864_v30 = vld [vmem:[%s1881_s6 + $0x30] sm:$0x3] }
  0x57   : > { %1570 = vmatmul.msk.bf16.gmra.mxu1 %vm304_vm1, %v1896_v10  ;;  %1586 = vmatmul.msk.bf16.gmra.mxu2 %vm304_vm1, %v426_v56  ;;  %v683_v10 = vshrl.u32 %v2033_v61, 16  ;;  %v1209_v56 = vld [vmem:[%s2412_s3 + $0x10] sm:$0xff] }
  0x58   : > { %1242 = vperm.xlu1 %1790, %v1209_v56  }
  0x59   : > { %v685_v3 = vrot.slane %v683_v10, 1 }
  0x5a   : > { %1620 = vmatmul.msk.bf16.gmra.mxu3 %vm304_vm1, %v554_v39  ;;  %1637 = vmatmul.msk.bf16.gmra.mxu0 %vm304_vm1, %v681_v60  ;;  %v901_v39 = vrot.slane %v2067_v37, 2 }
  0x5b   : > { %v689_v12 = vor.u32 %v688_v4, %v685_v3  ;;  %v2110_v3 = vld [vmem:[%s1881_s6 + $0x28] sm:$0xff] }
  0x5c   : > { %v902_v0 = vsel %vm771_vm4, %v899_v46, %v901_v39  ;;  %v1026_v4 = vshrl.u32 %v2110_v3, 16  ;;  %v1029_v5 = vshll.u32 %v2110_v3, 16  ;;  %v905_v44 = vrot.slane %v2110_v3, 2 }
  0x5d   : > { %v690_v18 = vsel %vm637_vm3, %v680_v54, %v689_v12  ;;  %v1017_v54 = vshrl.u32 %v2084_v53, 16 }
  0x5e   : > { %v1028_v14 = vrot.slane %v1026_v4, 2 }
  0x5f   : > { %v1019_v57 = vrot.slane %v1017_v54, 2  ;;  %v1211_v54 = vld [vmem:[%s2412_s3 + $0x20] sm:$0xff] }
  0x60   : > { %1247 = vperm.xlu1 %1790, %v1210_v7   ;;  %1252 = vperm.xlu2 %1791, %v1211_v54  }
  0x61   : > { %v1023_v60 = vor.u32 %v1022_v58, %v1019_v57  ;;  %v891_v58 = vunpack.c.l.b16 %v864_v30 }
  0x67   : > { %1571 = vmatmul.msk.bf16.gmra.mxu1 %vm304_vm1, %v1899_v11  ;;  %1587 = vmatmul.msk.bf16.gmra.mxu2 %vm304_vm1, %v428_v15  ;;  %v1001_v11 = vrot.slane %v999_v28, 2  ;;  %v1031_v15 = vrot.slane %v1029_v5, 3  ;;  %v1131_v28 = vrot.slane %v2110_v3, 3 }
  0x68   : > { %1267 = vperm.xlu1 %1790, %v1214_v48  }
  0x69   : > { %v1005_v32 = vor.u32 %v1004_v27, %v1001_v11  ;;  %v1032_v20 = vor.u32 %v1031_v15, %v1028_v14  ;;  %v1132_v27 = vsel %vm1123_vm6, %v1129_v62, %v1131_v28  ;;  %v897_v62 = vpack.c.b16 %v891_v58, %v891_v58 }
  0x6a   : > { %1621 = vmatmul.msk.bf16.gmra.mxu3 %vm304_vm1, %v556_v17  ;;  %1638 = vmatmul.msk.bf16.gmra.mxu0 %vm304_vm1, %v690_v18  ;;  %v903_v17 = vrot.slane %v2084_v53, 2  ;;  %v980_v18 = vld [vmem:[%s1881_s6 + $0x30] sm:$0x7] }
  0x6b   : > { %v1006_v35 = vsel %vm989_vm5, %v997_v31, %v1005_v32  ;;  %v1015_v51 = vsel %vm989_vm5, %v1005_v32, %v1014_v47  ;;  %v987_v21 = vunpack.c.l.b16 %v980_v18  ;;  %v1033_v41 = vsel %vm989_vm5, %v1023_v60, %v1032_v20  ;;  %v1213_v31 = vld [vmem:[%s2412_s3 + $0x30] sm:$0xff] }
  0x6c   : > { %v904_v24 = vsel %vm771_vm4, %v901_v39, %v903_v17  ;;  %1262 = vperm.xlu0 %1789, %v1213_v31   ;;  %v907_v3 = vrot.slane %v897_v62, 2 }
  0x6d   : > { %v988_v29 = vpack.c.b16 %v987_v21, %v987_v21 }
  0x6f   : > { %v1035_v33 = vshrl.u32 %v988_v29, 16  ;;  %v1038_v34 = vshll.u32 %v988_v29, 16 }
  0x71   : > { %v1037_v9 = vrot.slane %v1035_v33, 2  ;;  %v1040_v42 = vrot.slane %v1038_v34, 3 }
  0x74   : > { %1277 = vperm.xlu0 %1789, %v1216_v38  }
  0x77   : > { %1588 = vmatmul.msk.bf16.gmra.mxu2 %vm304_vm1, %v2017_v45  ;;  %1651 = vmatmul.msk.bf16.vlgmr.msra.gmra.mxu1 %vm304_vm1, %v774_v59  ;;  %v898_v45 = vrot.slane %v892_v19, 2  ;;  %v777_v59 = vrot.slane %v1984_v25, 2 }
  0x79   : > { %v900_v50 = vsel %vm771_vm4, %v898_v45, %v899_v46  ;;  %v778_v10 = vsel %vm771_vm4, %v775_v49, %v777_v59  ;;  %v780_v23 = vsel %vm771_vm4, %v777_v59, %v779_v16  ;;  %v1041_v46 = vor.u32 %v1040_v42, %v1037_v9 }
  0x7a   : > { %1701 = vmatmul.msk.bf16.vlgmr.msra.gmra.mxu3 %vm304_vm1, %v1006_v35  ;;  %1718 = vmatmul.msk.bf16.vlgmr.msra.gmra.mxu0 %vm304_vm1, %v1126_v36 }
  0x7b   : > { %v1042_v55 = vsel %vm989_vm5, %v1032_v20, %v1041_v46 }
  0x87   : > { %1652 = vmatmul.msk.bf16.gmra.mxu1 %vm304_vm1, %v776_v1  ;;  %1684 = vmatmul.msk.bf16.vlgmr.msra.gmra.mxu2 %vm304_vm1, %v900_v50  ;;  %v1024_v1 = vsel %vm989_vm5, %v1014_v47, %v1023_v60  ;;  %v1133_v47 = vrot.slane %v988_v29, 3 }
  0x89   : > { %v1134_v57 = vsel %vm1123_vm6, %v1131_v28, %v1133_v47 }
  0x8a   : > { %1702 = vmatmul.msk.bf16.gmra.mxu3 %vm304_vm1, %v1015_v51  ;;  %1719 = vmatmul.msk.bf16.gmra.mxu0 %vm304_vm1, %v1128_v52  ;;  %v782_v51 = vsel %vm771_vm4, %v779_v16, %v781_v43  ;;  %v906_v52 = vsel %vm771_vm4, %v903_v17, %v905_v44 }
  0x94   : > { %v2099_v63 = vpop.f32.mrf.mxu1 }
  0x97   : > { %1653 = vmatmul.msk.bf16.gmra.mxu1 %vm304_vm1, %v778_v10  ;;  %1685 = vmatmul.msk.bf16.gmra.mxu2 %vm304_vm1, %v902_v0  ;;  %v329_v25 = vpop.f32.mrf.mxu0 }
  0x9a   : > { %v2115_v49 = vpop.f32.mrf.mxu2  ;;  %1703 = vmatmul.msk.bf16.gmra.mxu3 %vm304_vm1, %v1024_v1  ;;  %1720 = vmatmul.msk.bf16.gmra.mxu0 %vm304_vm1, %v1130_v2  ;;  %v1212_v1 = vld [vmem:[%s2412_s3 + $0x28] sm:$0xff] }
  0x9b   : > { %1257 = vperm.xlu2 %1791, %v1212_v1  }
  0x9c   : > { %v2121_v6 = vpop.f32.mrf.mxu1 }
  0x9d   : > { %v2123_v12 = vpop.f32.mrf.mxu3 }
  0x9f   : > { %v331_v13 = vpop.f32.mrf.mxu0 }
  0xa2   : > { %v2128_v19 = vpop.f32.mrf.mxu2 }
  0xa4   : > { %v385_v22 = vpop.f32.mrf.mxu1 }
  0xa5   : > { %v386_v11 = vadd.f32 %v385_v22, %v329_v25  ;;  %v2133_v8 = vpop.f32.mrf.mxu3 }
  0xa7   : > { %1654 = vmatmul.msk.bf16.gmra.mxu1 %vm304_vm1, %v780_v23  ;;  %1686 = vmatmul.msk.bf16.gmra.mxu2 %vm304_vm1, %v904_v24  ;;  %v727_v26 = vpop.f32.mrf.mxu0  ;;  %v1215_v24 = vld [vmem:[%s2412_s3 + $0x40] sm:$0xff] }
  0xa8   : > { %1272 = vperm.xlu2 %1791, %v1215_v24  }
  0xaa   : > { %v2142_v32 = vpop.f32.mrf.mxu2  ;;  %1704 = vmatmul.msk.bf16.gmra.mxu3 %vm304_vm1, %v1033_v41  ;;  %1721 = vmatmul.msk.bf16.gmra.mxu0 %vm304_vm1, %v1132_v27 }
  0xac   : > { %v387_v35 = vpop.f32.mrf.mxu1 }
  0xad   : > { %v388_v36 = vadd.f32 %v387_v35, %v331_v13  ;;  %v593_v37 = vpop.f32.mrf.mxu3  ;;  %v908_v13 = vsel %vm771_vm4, %v905_v44, %v907_v3 }
  0xaf   : > { %v729_v40 = vpop.f32.mrf.mxu0 }
  0xb2   : > { %v2151_v45 = vpop.f32.mrf.mxu2 }
  0xb4   : > { %v390_v50 = vpop.f32.mrf.mxu1 }
  0xb5   : > { %v391_v53 = vadd.f32 %v390_v50, %v2099_v63  ;;  %v595_v61 = vpop.f32.mrf.mxu3 }
  0xb7   : > { %1655 = vmatmul.msk.bf16.gmra.mxu1 %vm304_vm1, %v782_v51  ;;  %1687 = vmatmul.msk.bf16.gmra.mxu2 %vm304_vm1, %v906_v52  ;;  %v732_v56 = vpop.f32.mrf.mxu0 }
  0xba   : > { %v467_v59 = vpop.f32.mrf.mxu2  ;;  %1705 = vmatmul.msk.bf16.gmra.mxu3 %vm304_vm1, %v1042_v55  ;;  %1722 = vmatmul.msk.bf16.gmra.mxu0 %vm304_vm1, %v1134_v57 }
  0xbb   : > { %v492_v39 = vadd.f32 %v467_v59, %v386_v11 }
  0xbc   : > { %v392_v60 = vpop.f32.mrf.mxu1 }
  0xbd   : > { %v618_v63 = vadd.f32 %v593_v37, %v492_v39  ;;  %v393_v10 = vadd.f32 %v392_v60, %v2121_v6  ;;  %v598_v0 = vpop.f32.mrf.mxu3 }
  0xbf   : > { %v734_v25 = vpop.f32.mrf.mxu0  ;;  %v2173_v2 = vadd.f32 %v727_v26, %v618_v63 }
  0xc2   : > { %v469_v7 = vpop.f32.mrf.mxu2 }
  0xc3   : > { %v493_v4 = vadd.f32 %v469_v7, %v388_v36 }
  0xc4   : > { %v395_v5 = vpop.f32.mrf.mxu1 }
  0xc5   : > { %v619_v14 = vadd.f32 %v595_v61, %v493_v4  ;;  %v396_v15 = vadd.f32 %v395_v5, %v2115_v49  ;;  %v600_v16 = vpop.f32.mrf.mxu3 }
  0xc7   : > { %1688 = vmatmul.msk.bf16.gmra.mxu2 %vm304_vm1, %v908_v13  ;;  %v737_v6 = vpop.f32.mrf.mxu0  ;;  %v2178_v17 = vadd.f32 %v729_v40, %v619_v14 }
  0xca   : > { %v472_v18 = vpop.f32.mrf.mxu2 }
  0xcb   : > { %v494_v20 = vadd.f32 %v472_v18, %v391_v53 }
  0xcc   : > { %v397_v28 = vpop.f32.mrf.mxu1 }
  0xcd   : > { %v620_v21 = vadd.f32 %v598_v0, %v494_v20  ;;  %v398_v22 = vadd.f32 %v397_v28, %v2128_v19  ;;  %v603_v23 = vpop.f32.mrf.mxu3 }
  0xcf   : > { %v739_v11 = vpop.f32.mrf.mxu0  ;;  %v2184_v49 = vadd.f32 %v732_v56, %v620_v21  ;;  %v2205_v21 = vpop.permute.xlu0 %1232 }
  0xd2   : > { %v474_v41 = vpop.f32.mrf.mxu2 }
  0xd3   : > { %v495_v26 = vadd.f32 %v474_v41, %v393_v10  ;;  %v2211_v41 = vld [vmem:[%s2411_s2] ss:$0 sm:$0xff] }
  0xd4   : > { %v400_v27 = vpop.f32.mrf.mxu1 }
  0xd5   : > { %v621_v29 = vadd.f32 %v600_v16, %v495_v26  ;;  %v401_v31 = vadd.f32 %v400_v27, %v2142_v32  ;;  %v605_v33 = vpop.f32.mrf.mxu3 }
  0xd7   : > { %v742_v34 = vpop.f32.mrf.mxu0  ;;  %v2187_v35 = vadd.f32 %v734_v25, %v621_v29 }
  0xda   : > { %v477_v19 = vpop.f32.mrf.mxu2 }
  0xdb   : > { %v496_v36 = vadd.f32 %v477_v19, %v396_v15 }
  0xdc   : > { %v402_v37 = vpop.f32.mrf.mxu1 }
  0xdd   : > { %v622_v38 = vadd.f32 %v603_v23, %v496_v36  ;;  %v403_v40 = vadd.f32 %v402_v37, %v2151_v45  ;;  %v608_v9 = vpop.f32.mrf.mxu3 }
  0xdf   : > { %v744_v42 = vpop.f32.mrf.mxu0  ;;  %v2190_v43 = vadd.f32 %v737_v6, %v622_v38 }
  0xe2   : > { %v479_v44 = vpop.f32.mrf.mxu2 }
  0xe3   : > { %v497_v46 = vadd.f32 %v479_v44, %v398_v22 }
  0xe4   : > { %v405_v47 = vpop.f32.mrf.mxu1 }
  0xe5   : > { %v623_v48 = vadd.f32 %v605_v33, %v497_v46  ;;  %v406_v32 = vadd.f32 %v405_v47, %v2123_v12  ;;  %v610_v50 = vpop.f32.mrf.mxu3 }
  0xe7   : > { %v2193_v51 = vadd.f32 %v739_v11, %v623_v48  ;;  %v747_v52 = vpop.f32.mrf.mxu0 }
  0xea   : > { %v482_v53 = vpop.f32.mrf.mxu2 }
  0xeb   : > { %v498_v61 = vadd.f32 %v482_v53, %v401_v31 }
  0xec   : > { %v407_v30 = vpop.f32.mrf.mxu1 }
  0xed   : > { %v624_v54 = vadd.f32 %v608_v9, %v498_v61  ;;  %v408_v45 = vadd.f32 %v407_v30, %v2133_v8  ;;  %v613_v55 = vpop.f32.mrf.mxu3 }
  0xef   : > { %v2196_v56 = vadd.f32 %v742_v34, %v624_v54  ;;  %v749_v58 = vpop.f32.mrf.mxu0  ;;  %v2216_v34 = vpop.permute.xlu0 %1237 }
  0xf2   : > { %v484_v57 = vpop.f32.mrf.mxu2 }
  0xf3   : > { %v499_v59 = vadd.f32 %v484_v57, %v403_v40 }
  0xf4   : > { %v819_v39 = vpop.f32.mrf.mxu1 }
  0xf5   : > { %v625_v60 = vadd.f32 %v610_v50, %v499_v59  ;;  %v615_v62 = vpop.f32.mrf.mxu3  ;;  %v844_v6 = vadd.f32 %v819_v39, %v2173_v2 }
  0xf7   : > { %v2198_v12 = vadd.f32 %v744_v42, %v625_v60  ;;  %v1171_v0 = vpop.f32.mrf.mxu0 }
  0xfa   : > { %v487_v63 = vpop.f32.mrf.mxu2 }
  0xfb   : > { %v500_v10 = vadd.f32 %v487_v63, %v406_v32 }
  0xfc   : > { %v821_v3 = vpop.f32.mrf.mxu1 }
  0xfd   : > { %v626_v1 = vadd.f32 %v613_v55, %v500_v10  ;;  %v1079_v25 = vpop.f32.mrf.mxu3  ;;  %v845_v24 = vadd.f32 %v821_v3, %v2178_v17 }
  0xff   : > { %v2200_v7 = vadd.f32 %v747_v52, %v626_v1  ;;  %v1173_v14 = vpop.f32.mrf.mxu0 }
 0x102   : > { %v489_v8 = vpop.f32.mrf.mxu2 }
 0x103   : > { %v501_v4 = vadd.f32 %v489_v8, %v408_v45 }
 0x104   : > { %v824_v16 = vpop.f32.mrf.mxu1 }
 0x105   : > { %v627_v5 = vadd.f32 %v615_v62, %v501_v4  ;;  %v1081_v13 = vpop.f32.mrf.mxu3  ;;  %v846_v36 = vadd.f32 %v824_v16, %v2184_v49  ;;  %v2228_v49 = vpop.permute.xlu1 %1242 }
 0x107   : > { %v2202_v15 = vadd.f32 %v749_v58, %v627_v5  ;;  %v1176_v23 = vpop.f32.mrf.mxu0 }
 0x10a   : > { %v945_v18 = vpop.f32.mrf.mxu2 }
 0x10b   : > { %v970_v20 = vadd.f32 %v945_v18, %v844_v6 }
 0x10c   : > { %v826_v26 = vpop.f32.mrf.mxu1 }
 0x10d   : > { %v1104_v28 = vadd.f32 %v1079_v25, %v970_v20  ;;  %v1084_v22 = vpop.f32.mrf.mxu3  ;;  %v847_v52 = vadd.f32 %v826_v26, %v2187_v35  ;;  %v2237_v62 = vpop.permute.xlu1 %1247 }
 0x10f   : > { %v1196_v11 = vadd.f32 %v1171_v0, %v1104_v28  ;;  %v1178_v40 = vpop.f32.mrf.mxu0 }
 0x111   : > { %v2214_v2 = vadd.f32 %v2211_v41, %v1196_v11 }
 0x112   : > { %v947_v27 = vpop.f32.mrf.mxu2 }
 0x113   : > { %v971_v29 = vadd.f32 %v947_v27, %v845_v24  ;;  %v1280_v17 = vmul.f32 %v2205_v21, %v2214_v2 }
 0x114   : > { %v829_v44 = vpop.f32.mrf.mxu1 }
 0x115   : > { %v1105_v31 = vadd.f32 %v1081_v13, %v971_v29  ;;  %v1086_v19 = vpop.f32.mrf.mxu3  ;;  %v1290_v46 = vsel %vm304_vm1, %v1280_v17, 0.0  ;;  %v848_v35 = vadd.f32 %v829_v44, %v2190_v43  ;;  %v2246_v13 = vpop.permute.xlu2 %1252 }
 0x117   : > { %v1197_v33 = vadd.f32 %v1173_v14, %v1105_v31  ;;  %v1181_v55 = vpop.f32.mrf.mxu0 }
 0x119   : > { %v2222_v37 = vadd.f32 %v2211_v41, %v1197_v33 }
 0x11a   : > { %v950_v38 = vpop.f32.mrf.mxu2 }
 0x11b   : > { %v1281_v9 = vmul.f32 %v2216_v34, %v2222_v37  ;;  %v972_v42 = vadd.f32 %v950_v38, %v846_v36 }
 0x11c   : > { %v831_v59 = vpop.f32.mrf.mxu1 }
 0x11d   : > { %v1291_v47 = vsel %vm304_vm1, %v1281_v9, 0.0  ;;  %v1106_v48 = vadd.f32 %v1084_v22, %v972_v42  ;;  %v1089_v30 = vpop.f32.mrf.mxu3  ;;  %v849_v43 = vadd.f32 %v831_v59, %v2193_v51  ;;  %v2255_v29 = vpop.permute.xlu2 %1257 }
 0x11e   : > { %v1292_v32 = vadd.f32 %v1291_v47, %v1290_v46  ;;  %v2265_v47 = vpop.permute.xlu0 %1262 }
 0x11f   : > { %v1198_v50 = vadd.f32 %v1176_v23, %v1106_v48  ;;  %v1183_v5 = vpop.f32.mrf.mxu0 }
 0x121   : > { %v2232_v53 = vadd.f32 %v2211_v41, %v1198_v50 }
 0x122   : > { %v952_v61 = vpop.f32.mrf.mxu2 }
 0x123   : > { %v1282_v54 = vmul.f32 %v2228_v49, %v2232_v53  ;;  %v973_v45 = vadd.f32 %v952_v61, %v847_v52 }
 0x124   : > { %v834_v16 = vpop.f32.mrf.mxu1 }
 0x125   : > { %v1293_v57 = vsel %vm304_vm1, %v1282_v54, 0.0  ;;  %v1107_v58 = vadd.f32 %v1086_v19, %v973_v45  ;;  %v1091_v25 = vpop.f32.mrf.mxu3  ;;  %v850_v31 = vadd.f32 %v834_v16, %v2196_v56 }
 0x126   : > { %v1294_v39 = vadd.f32 %v1293_v57, %v1292_v32 }
 0x127   : > { %v1199_v60 = vadd.f32 %v1178_v40, %v1107_v58  ;;  %v1186_v27 = vpop.f32.mrf.mxu0  ;;  %v2271_v58 = vpop.permute.xlu1 %1267 }
 0x129   : > { %v2241_v63 = vadd.f32 %v2211_v41, %v1199_v60 }
 0x12a   : > { %v955_v10 = vpop.f32.mrf.mxu2 }
 0x12b   : > { %v1283_v0 = vmul.f32 %v2237_v62, %v2241_v63  ;;  %v974_v1 = vadd.f32 %v955_v10, %v848_v35 }
 0x12c   : > { %v836_v33 = vpop.f32.mrf.mxu1 }
 0x12d   : > { %v1295_v3 = vsel %vm304_vm1, %v1283_v0, 0.0  ;;  %v1108_v8 = vadd.f32 %v1089_v30, %v974_v1  ;;  %v1094_v11 = vpop.f32.mrf.mxu3  ;;  %v851_v46 = vadd.f32 %v836_v33, %v2198_v12 }
 0x12e   : > { %v1296_v4 = vadd.f32 %v1295_v3, %v1294_v39 }
 0x12f   : > { %v1200_v14 = vadd.f32 %v1181_v55, %v1108_v8  ;;  %v1188_v48 = vpop.f32.mrf.mxu0 }
 0x131   : > { %v2250_v6 = vadd.f32 %v2211_v41, %v1200_v14 }
 0x132   : > { %v957_v18 = vpop.f32.mrf.mxu2 }
 0x133   : > { %v1284_v20 = vmul.f32 %v2246_v13, %v2250_v6  ;;  %v975_v28 = vadd.f32 %v957_v18, %v849_v43 }
 0x134   : > { %v839_v61 = vpop.f32.mrf.mxu1 }
 0x135   : > { %v1297_v22 = vsel %vm304_vm1, %v1284_v20, 0.0  ;;  %v1109_v23 = vadd.f32 %v1091_v25, %v975_v28  ;;  %v1096_v44 = vpop.f32.mrf.mxu3  ;;  %v852_v57 = vadd.f32 %v839_v61, %v2200_v7 }
 0x136   : > { %v1298_v24 = vadd.f32 %v1297_v22, %v1296_v4 }
 0x137   : > { %v1201_v26 = vadd.f32 %v1183_v5, %v1109_v23  ;;  %v1191_v10 = vpop.f32.mrf.mxu0  ;;  %v1273_v5 = vpop.permute.xlu2 %1272 }
 0x139   : > { %v2259_v51 = vadd.f32 %v2211_v41, %v1201_v26  ;;  %v1278_v26 = vpop.permute.xlu0 %1277 }
 0x13a   : > { %v960_v19 = vpop.f32.mrf.mxu2 }
 0x13b   : > { %v1285_v36 = vmul.f32 %v2255_v29, %v2259_v51  ;;  %v976_v17 = vadd.f32 %v960_v19, %v850_v31 }
 0x13c   : > { %v841_v25 = vpop.f32.mrf.mxu1 }
 0x13d   : > { %v1299_v38 = vsel %vm304_vm1, %v1285_v36, 0.0  ;;  %v1110_v40 = vadd.f32 %v1094_v11, %v976_v17  ;;  %v1099_v59 = vpop.f32.mrf.mxu3  ;;  %v853_v4 = vadd.f32 %v841_v25, %v2202_v15 }
 0x13e   : > { %v1300_v9 = vadd.f32 %v1299_v38, %v1298_v24 }
 0x13f   : > { %v1202_v42 = vadd.f32 %v1186_v27, %v1110_v40  ;;  %v1193_v23 = vpop.f32.mrf.mxu0 }
 0x141   : > { %v1226_v56 = vadd.f32 %v2211_v41, %v1202_v42 }
 0x142   : > { %v962_v32 = vpop.f32.mrf.mxu2 }
 0x143   : > { %v977_v50 = vadd.f32 %v962_v32, %v851_v46  ;;  %v1286_v52 = vmul.f32 %v2265_v47, %v1226_v56 }
 0x145   : > { %v1111_v30 = vadd.f32 %v1096_v44, %v977_v50  ;;  %v1301_v54 = vsel %vm304_vm1, %v1286_v52, 0.0  ;;  %v1101_v18 = vpop.f32.mrf.mxu3 }
 0x146   : > { %v1302_v45 = vadd.f32 %v1301_v54, %v1300_v9 }
 0x147   : > { %v1203_v55 = vadd.f32 %v1188_v48, %v1111_v30 }
 0x149   : > { %v1227_v12 = vadd.f32 %v2211_v41, %v1203_v55 }
 0x14a   : > { %v965_v39 = vpop.f32.mrf.mxu2 }
 0x14b   : > { %v1287_v60 = vmul.f32 %v2271_v58, %v1227_v12  ;;  %v978_v35 = vadd.f32 %v965_v39, %v852_v57 }
 0x14d   : > { %v1303_v0 = vsel %vm304_vm1, %v1287_v60, 0.0  ;;  %v1112_v1 = vadd.f32 %v1099_v59, %v978_v35 }
 0x14e   : > { %v1304_v3 = vadd.f32 %v1303_v0, %v1302_v45 }
 0x14f   : > { %v1204_v8 = vadd.f32 %v1191_v10, %v1112_v1 }
 0x151   : > { %v1228_v7 = vadd.f32 %v2211_v41, %v1204_v8 }
 0x152   : > { %v967_v14 = vpop.f32.mrf.mxu2 }
 0x153   : > { %v1288_v16 = vmul.f32 %v1273_v5, %v1228_v7  ;;  %v979_v43 = vadd.f32 %v967_v14, %v853_v4 }
 0x155   : > { %v1305_v20 = vsel %vm304_vm1, %v1288_v16, 0.0  ;;  %v1113_v28 = vadd.f32 %v1101_v18, %v979_v43 }
 0x156   : > { %v1306_v22 = vadd.f32 %v1305_v20, %v1304_v3 }
 0x157   : > { %v1205_v24 = vadd.f32 %v1193_v23, %v1113_v28 }
 0x159   : > { %v1229_v11 = vadd.f32 %v2211_v41, %v1205_v24 }
 0x15b   : > { %v1289_v27 = vmul.f32 %v1278_v26, %v1229_v11 }
 0x15d   : > { %v1307_v31 = vsel %vm304_vm1, %v1289_v27, 0.0 }
 0x15e   : > { %v1308_v15 = vadd.f32 %v1307_v31, %v1306_v22 }
 0x160   : > { %v1309_v33 = vrot.slane %v1308_v15, 4 }
 0x162   : > { %v1310_v19 = vadd.f32 %v1309_v33, %v1308_v15 }
 0x164   : > { %v1311_v36 = vrot.slane %v1310_v19, 2 }
 0x166   : > { %v1312_v17 = vadd.f32 %v1311_v36, %v1310_v19 }
 0x168   : > { %v1313_v38 = vrot.slane %v1312_v17, 1 }
 0x16a   : > { %v1314_v40 = vadd.f32 %v1313_v38, %v1312_v17 }
 0x16c   : > { %v1315_v9 = vmul.f32 0.015625, %v1314_v40 }
 0x16e   : > { %v2282_v42 = vsub.f32 %v2214_v2, %v1315_v9  ;;  %v2285_v44 = vsub.f32 %v2222_v37, %v1315_v9  ;;  %v2288_v41 = vsub.f32 %v2232_v53, %v1315_v9  ;;  %v2291_v46 = vsub.f32 %v2241_v63, %v1315_v9 }
 0x16f   : > { %v2294_v48 = vsub.f32 %v2250_v6, %v1315_v9  ;;  %v2297_v32 = vsub.f32 %v2259_v51, %v1315_v9  ;;  %v2299_v50 = vsub.f32 %v1226_v56, %v1315_v9  ;;  %v2301_v52 = vsub.f32 %v1227_v12, %v1315_v9 }
 0x170   : > { %v2303_v2 = vsub.f32 %v1228_v7, %v1315_v9  ;;  %v2305_v37 = vsub.f32 %v1229_v11, %v1315_v9  ;;  %v1326_v53 = vmul.f32 %v2282_v42, %v2282_v42  ;;  %v1327_v63 = vmul.f32 %v2285_v44, %v2285_v44 }
 0x171   : > { %v1328_v6 = vmul.f32 %v2288_v41, %v2288_v41  ;;  %v1329_v51 = vmul.f32 %v2291_v46, %v2291_v46  ;;  %v1330_v56 = vmul.f32 %v2294_v48, %v2294_v48  ;;  %v1331_v45 = vmul.f32 %v2297_v32, %v2297_v32 }
 0x172   : > { %v1336_v61 = vmul.f32 %v1326_v53, %v2205_v21  ;;  %v1337_v30 = vmul.f32 %v1327_v63, %v2216_v34  ;;  %v1332_v39 = vmul.f32 %v2299_v50, %v2299_v50  ;;  %v1334_v0 = vmul.f32 %v2303_v2, %v2303_v2 }
 0x173   : > { %v1338_v54 = vmul.f32 %v1328_v6, %v2228_v49  ;;  %v1339_v55 = vmul.f32 %v1329_v51, %v2237_v62  ;;  %v1340_v60 = vmul.f32 %v1330_v56, %v2246_v13  ;;  %v1333_v49 = vmul.f32 %v2301_v52, %v2301_v52 }
 0x174   : > { %v1346_v57 = vsel %vm304_vm1, %v1336_v61, 0.0  ;;  %v1347_v12 = vsel %vm304_vm1, %v1337_v30, 0.0  ;;  %v1341_v35 = vmul.f32 %v1331_v45, %v2255_v29  ;;  %v1342_v1 = vmul.f32 %v1332_v39, %v2265_v47 }
 0x175   : > { %v1348_v59 = vadd.f32 %v1347_v12, %v1346_v57  ;;  %v1349_v21 = vsel %vm304_vm1, %v1338_v54, 0.0  ;;  %v1351_v62 = vsel %vm304_vm1, %v1339_v55, 0.0  ;;  %v1353_v25 = vsel %vm304_vm1, %v1340_v60, 0.0 }
 0x176   : > { %v1335_v13 = vmul.f32 %v2305_v37, %v2305_v37  ;;  %v1343_v8 = vmul.f32 %v1333_v49, %v2271_v58  ;;  %v1355_v4 = vsel %vm304_vm1, %v1341_v35, 0.0  ;;  %v1344_v29 = vmul.f32 %v1334_v0, %v1273_v5 }
 0x177   : > { %v1350_v34 = vadd.f32 %v1349_v21, %v1348_v59  ;;  %v1357_v14 = vsel %vm304_vm1, %v1342_v1, 0.0 }
 0x178   : > { %v1345_v43 = vmul.f32 %v1335_v13, %v1278_v26  ;;  %v1359_v18 = vsel %vm304_vm1, %v1343_v8, 0.0  ;;  %v1361_v47 = vsel %vm304_vm1, %v1344_v29, 0.0 }
 0x179   : > { %v1352_v10 = vadd.f32 %v1351_v62, %v1350_v34 }
 0x17a   : > { %v1363_v22 = vsel %vm304_vm1, %v1345_v43, 0.0 }
 0x17b   : > { %v1354_v3 = vadd.f32 %v1353_v25, %v1352_v10 }
 0x17d   : > { %v1356_v7 = vadd.f32 %v1355_v4, %v1354_v3 }
 0x17f   : > { %v1358_v16 = vadd.f32 %v1357_v14, %v1356_v7 }
 0x181   : > { %v1360_v20 = vadd.f32 %v1359_v18, %v1358_v16 }
 0x183   : > { %v1362_v28 = vadd.f32 %v1361_v47, %v1360_v20 }
 0x185   : > { %v1364_v23 = vadd.f32 %v1363_v22, %v1362_v28 }
 0x187   : > { %v1365_v24 = vrot.slane %v1364_v23, 4 }
 0x189   : > { %v1366_v11 = vadd.f32 %v1365_v24, %v1364_v23 }
 0x18b   : > { %v1367_v58 = vrot.slane %v1366_v11, 2 }
 0x18d   : > { %v1368_v27 = vadd.f32 %v1367_v58, %v1366_v11 }
 0x18f   : > { %v1369_v31 = vrot.slane %v1368_v27, 1 }
 0x191   : > { %v1370_v15 = vadd.f32 %v1369_v31, %v1368_v27 }
 0x193   : > { %v1371_v5 = vmul.f32 0.015625, %v1370_v15 }
 0x195   : > { %v1372_v33 = vadd.f32 1e-05, %v1371_v5 }
 0x197   : > { %1793 = vrsqrt.f32 %v1372_v33  ;;  %vm1379_vm8 = vweird.f32 %v1372_v33 }
 0x19d   : > { %v1794_v19 = vpop.eup %1793 }
 0x19e   : > { %v1374_v26 = vmul.f32 %v1794_v19, %v1372_v33  ;;  %vm1380_vm7 = vweird.f32 %v1794_v19 }
 0x19f   : > { %vm1381_vm9 = vmor %vm1379_vm8, %vm1380_vm7 }
 0x1a0   : > { %v1375_v36 = vmul.f32 %v1794_v19, %v1374_v26 }
 0x1a2   : > { %v1376_v17 = vmul.f32 0.5, %v1375_v36 }
 0x1a4   : > { %v1377_v38 = vsub.f32 1.5, %v1376_v17 }
 0x1a6   : > { %v1378_v40 = vmul.f32 %v1794_v19, %v1377_v38 }
 0x1a8   : > { %v1382_v9 = vsel %vm1381_vm9, %v1794_v19, %v1378_v40 }
 0x1a9   : > { %v1383_v53 = vmul.f32 %v1382_v9, %v2282_v42  ;;  %v1384_v63 = vmul.f32 %v1382_v9, %v2285_v44  ;;  %v1385_v6 = vmul.f32 %v1382_v9, %v2288_v41  ;;  %v1386_v51 = vmul.f32 %v1382_v9, %v2291_v46 }
 0x1aa   : > { %v1387_v56 = vmul.f32 %v1382_v9, %v2294_v48  ;;  %v2351_v61 = vmul.f32 %v1382_v9, %v2297_v32  ;;  %v2354_v30 = vmul.f32 %v1382_v9, %v2299_v50  ;;  %v2357_v54 = vmul.f32 %v1382_v9, %v2301_v52 }
 0x1ab   : > { %v2360_v45 = vmul.f32 %v1382_v9, %v2303_v2  ;;  %v2363_v42 = vmul.f32 %v1382_v9, %v2305_v37  ;;  %v1403_v44 = vmul.f32 1.442695, %v1383_v53  ;;  %v1405_v41 = vmul.f32 1.442695, %v1384_v63 }
 0x1ac   : > { %v1407_v46 = vmul.f32 1.442695, %v1385_v6  ;;  %v1409_v48 = vmul.f32 1.442695, %v1386_v51  ;;  %v1411_v32 = vmul.f32 1.442695, %v1387_v56 }
 0x1ad   : > { %1795 = vpow2.f32 %v1403_v44  ;;  %v1413_v50 = vmul.f32 1.442695, %v2351_v61  ;;  %v1415_v52 = vmul.f32 1.442695, %v2354_v30  ;;  %v1417_v2 = vmul.f32 1.442695, %v2357_v54 }
 0x1ae   : > { %1797 = vpow2.f32 %v1405_v41  ;;  %v1419_v55 = vmul.f32 1.442695, %v2360_v45  ;;  %v1421_v37 = vmul.f32 1.442695, %v2363_v42  ;;  %vm1393_vm10 = vcmp.gt.f32.partialorder %v1383_v53, 0.0 }
 0x1af   : > { %1799 = vpow2.f32 %v1407_v46  ;;  %vm1394_vm12 = vcmp.gt.f32.partialorder %v1384_v63, 0.0  ;;  %vm1395_vm13 = vcmp.gt.f32.partialorder %v1385_v6, 0.0  ;;  %vm1396_vm14 = vcmp.gt.f32.partialorder %v1386_v51, 0.0 }
 0x1b0   : > { %1801 = vpow2.f32 %v1409_v48  ;;  %vm1397_vm15 = vcmp.gt.f32.partialorder %v1387_v56, 0.0  ;;  %vm1398_vm0 = vcmp.gt.f32.partialorder %v2351_v61, 0.0  ;;  %vm1399_vm1 = vcmp.gt.f32.partialorder %v2354_v30, 0.0 }
 0x1b1   : > { %1803 = vpow2.f32 %v1411_v32  ;;  %vm1400_vm2 = vcmp.gt.f32.partialorder %v2357_v54, 0.0  ;;  %vm1401_vm3 = vcmp.gt.f32.partialorder %v2360_v45, 0.0  ;;  %vm1402_vm4 = vcmp.gt.f32.partialorder %v2363_v42, 0.0 }
 0x1b2   : > { %1805 = vpow2.f32 %v1413_v50 }
 0x1b3   : > { %v1796_v57 = vpop.eup %1795  ;;  %1807 = vpow2.f32 %v1415_v52 }
 0x1b4   : > { %v1798_v12 = vpop.eup %1797  ;;  %1809 = vpow2.f32 %v1417_v2  ;;  %v1723_v59 = vadd.f32 -1.0, %v1796_v57 }
 0x1b5   : > { %v1800_v39 = vpop.eup %1799  ;;  %1811 = vpow2.f32 %v1419_v55  ;;  %v1724_v60 = vadd.f32 -1.0, %v1798_v12 }
 0x1b6   : > { %v1802_v21 = vpop.eup %1801  ;;  %1813 = vpow2.f32 %v1421_v37  ;;  %v1725_v34 = vadd.f32 -1.0, %v1800_v39  ;;  %v1433_v49 = vsel %vm1393_vm10, %v1383_v53, %v1723_v59 }
 0x1b7   : > { %v1804_v35 = vpop.eup %1803  ;;  %v1726_v62 = vadd.f32 -1.0, %v1802_v21  ;;  %v1434_v10 = vsel %vm1394_vm12, %v1384_v63, %v1724_v60  ;;  %v1443_v0 = vpack.c.bf16 %v1433_v49, %v1433_v49 }
 0x1b8   : > { %v1806_v1 = vpop.eup %1805  ;;  %v1727_v25 = vadd.f32 -1.0, %v1804_v35  ;;  %v1435_v3 = vsel %vm1395_vm13, %v1385_v6, %v1725_v34  ;;  %v1444_v13 = vpack.c.bf16 %v1434_v10, %v1434_v10 }
 0x1b9   : > { %v1808_v8 = vpop.eup %1807  ;;  %v1728_v4 = vadd.f32 -1.0, %v1806_v1  ;;  %v1436_v7 = vsel %vm1396_vm14, %v1386_v51, %v1726_v62  ;;  %v1445_v29 = vpack.c.bf16 %v1435_v3, %v1435_v3  ;;  %1454 = vst.msk [vmem:[%s2374_s9] sm:$0xf] %vm1453_vm11, %v1443_v0 }
 0x1ba   : > { %v1810_v14 = vpop.eup %1809  ;;  %v1729_v16 = vadd.f32 -1.0, %v1808_v8  ;;  %v1437_v43 = vsel %vm1397_vm15, %v1387_v56, %v1727_v25  ;;  %v1446_v18 = vpack.c.bf16 %v1436_v7, %v1436_v7  ;;  %1455 = vst.msk [vmem:[%s2374_s9 + $0x4] sm:$0xf] %vm1453_vm11, %v1444_v13 }
 0x1bb   : > { %v1812_v20 = vpop.eup %1811  ;;  %v1730_v47 = vadd.f32 -1.0, %v1810_v14  ;;  %v1438_v28 = vsel %vm1398_vm0, %v2351_v61, %v1728_v4  ;;  %v1447_v22 = vpack.c.bf16 %v1437_v43, %v1437_v43  ;;  %1456 = vst.msk [vmem:[%s2374_s9 + $0x8] sm:$0xf] %vm1453_vm11, %v1445_v29 }
 0x1bc   : > { %v1814_v23 = vpop.eup %1813  ;;  %v1731_v24 = vadd.f32 -1.0, %v1812_v20  ;;  %v1439_v11 = vsel %vm1399_vm1, %v2354_v30, %v1729_v16  ;;  %v1448_v58 = vpack.c.bf16 %v1438_v28, %v1438_v28  ;;  %1457 = vst.msk [vmem:[%s2374_s9 + $0xc] sm:$0xf] %vm1453_vm11, %v1446_v18 }
 0x1bd   : > { %v1732_v27 = vadd.f32 -1.0, %v1814_v23  ;;  %v1440_v31 = vsel %vm1400_vm2, %v2357_v54, %v1730_v47  ;;  %v1449_v15 = vpack.c.bf16 %v1439_v11, %v1439_v11  ;;  %1458 = vst.msk [vmem:[%s2374_s9 + $0x10] sm:$0xf] %vm1453_vm11, %v1447_v22 }
 0x1be   : > { %v1441_v5 = vsel %vm1401_vm3, %v2360_v45, %v1731_v24  ;;  %v1450_v33 = vpack.c.bf16 %v1440_v31, %v1440_v31  ;;  %1459 = vst.msk [vmem:[%s2374_s9 + $0x14] sm:$0xf] %vm1453_vm11, %v1448_v58 }
 0x1bf   : > { %v1442_v19 = vsel %vm1402_vm4, %v2363_v42, %v1732_v27  ;;  %v1451_v26 = vpack.c.bf16 %v1441_v5, %v1441_v5  ;;  %1460 = vst.msk [vmem:[%s2374_s9 + $0x18] sm:$0xf] %vm1453_vm11, %v1449_v15 }
 0x1c0   : > { %v1452_v36 = vpack.c.bf16 %v1442_v19, %v1442_v19  ;;  %1461 = vst.msk [vmem:[%s2374_s9 + $0x1c] sm:$0xf] %vm1453_vm11, %v1450_v33 }
 0x1c1   : > { %1462 = vst.msk [vmem:[%s2374_s9 + $0x20] sm:$0xf] %vm1453_vm11, %v1451_v26 }
 0x1c2   : > { %1463 = vst.msk [vmem:[%s2374_s9 + $0x24] sm:$0xf] %vm1453_vm11, %v1452_v36 }
 0x1c3 PF: > { %s14_s15 = sadd.s32 1, %s1821_s15  }
 0x1c4   : > { %p11_p4 = scmp.ge.s32.totalorder %s14_s15, 4  }
 0x1c6   :  { %13 = sbr.rel (!%p11_p4) target bundleno = 1 (0x1), region = 74 }

</bundles_post_ra>
